<compile_context>
chip_gen: v6e
topology: v6e:2x2x1
jax: 0.10.0
libtpu: 0.0.40
codegen_flags: <defaults>
</compile_context>

<pallas_src>
import functools
import numpy as np
import jax
import jax.numpy as jnp
from jax.experimental import pallas as pl
from jax.experimental.pallas import tpu as pltpu


# ---------------------------------------------------------------------------
# 3x3 conv (no bias) as 9 accumulated MXU matmuls, channels-last layout
# ---------------------------------------------------------------------------
def _conv3x3_mxu_kernel(x_ref, w_ref, o_ref, xpad_ref, *, H, W, Cin, Cout):
    """x_ref: (1, H, W, Cin); w_ref: (9, Cin, Cout); o_ref: (1, H*W, Cout)."""
    # Build the zero halo in VMEM (no padded copy in HBM).
    xpad_ref[...] = jnp.zeros(xpad_ref.shape, xpad_ref.dtype)
    xpad_ref[1:H + 1, 1:W + 1, :] = x_ref[0]

    acc = jnp.zeros((H * W, Cout), jnp.float32)
    for t in range(9):                                  # 9 taps, fully unrolled
        dy, dx = t // 3, t % 3
        xs = xpad_ref[dy:dy + H, dx:dx + W, :].reshape(H * W, Cin)
        # MXU matmul, f32 accumulation.  (Cast xs / w_ref[t] to bf16 here for
        # v6e/v7x peak if ~1e-2 tolerance is acceptable.)
        acc = acc + jnp.dot(xs, w_ref[t], preferred_element_type=jnp.float32)
    o_ref[0] = acc.astype(o_ref.dtype)


def conv3x3_nobias(x_nhwc, w_taps):
    """x_nhwc: (N, H, W, Cin) f32; w_taps: (9, Cin, Cout) f32 -> (N, H*W, Cout)."""
    N, H, W, Cin = x_nhwc.shape
    Cout = w_taps.shape[-1]
    kernel = functools.partial(_conv3x3_mxu_kernel, H=H, W=W, Cin=Cin, Cout=Cout)
    return pl.pallas_call(
        kernel,
        out_shape=jax.ShapeDtypeStruct((N, H * W, Cout), jnp.float32),
        grid=(N,),
        in_specs=[
            # one full (H, W, Cin) image per step, DMA'd exactly once
            pl.BlockSpec((1, H, W, Cin), lambda n: (n, 0, 0, 0)),
            # all 9 tap matrices resident in VMEM (same block every step)
            pl.BlockSpec((9, Cin, Cout), lambda n: (0, 0, 0)),
        ],
        out_specs=pl.BlockSpec((1, H * W, Cout), lambda n: (n, 0, 0)),
        scratch_shapes=[pltpu.VMEM((H + 2, W + 2, Cin), jnp.float32)],
        compiler_params=pltpu.CompilerParams(
            dimension_semantics=("parallel",)),
    )(x_nhwc, w_taps)


# ---------------------------------------------------------------------------
# Upsample.forward : conv3x3 (n_feat -> 2*n_feat, no bias) + PixelShuffle(2)
# ---------------------------------------------------------------------------
def upsample(x, w):
    """x: (N, C, H, W) f32;  w: (2C, C, 3, 3) f32 (PyTorch OIHW, bias=False)."""
    N, C, H, W = x.shape
    Cout = w.shape[0]                       # = 2 * C
    r = 2
    Cps = Cout // (r * r)                   # PixelShuffle output channels = C // 2

    # Layout plumbing (plain JAX): NCHW -> NHWC so channels sit on lanes.
    x_nhwc = jnp.transpose(x, (0, 2, 3, 1)).astype(jnp.float32)
    # (Cout, Cin, 3, 3) -> (9, Cin, Cout): one (Cin, Cout) matrix per tap.
    w_taps = jnp.transpose(w.reshape(Cout, C, 9), (2, 1, 0)).astype(jnp.float32)

    y = conv3x3_nobias(x_nhwc, w_taps)                 # (N, H*W, Cout), lane-dense
    # PixelShuffle(2) in channels-last, then back to NCHW (pure reshape/transpose).
    y = y.reshape(N, H, W, Cps, r, r)                  # k = c*4 + i*2 + j
    y = jnp.transpose(y, (0, 3, 1, 4, 2, 5))           # (N, Cps, H, r, W, r)
    return y.reshape(N, Cps, H * r, W * r)


# ---------------------------------------------------------------------------
# Pure-JAX reference (matches the PyTorch module exactly)
# ---------------------------------------------------------------------------
def upsample_ref(x, w):
    N, C, H, W = x.shape
    Cout = w.shape[0]
    r = 2
    Cps = Cout // (r * r)
    y = jax.lax.conv_general_dilated(
        x.astype(jnp.float32), w.astype(jnp.float32), (1, 1), "SAME",
        dimension_numbers=("NCHW", "OIHW", "NCHW"))
    y = y.reshape(N, Cps, r, r, H, W)
    y = jnp.transpose(y, (0, 1, 4, 2, 5, 3))           # (N, Cps, H, r, W, r)
    return y.reshape(N, Cps, H * r, W * r)


if __name__ == "__main__":
    key = jax.random.PRNGKey(0)
    kx, kw = jax.random.split(key)

    N, n_feat, H, W = 2, 8, 16, 16
    x = jax.random.normal(kx, (N, n_feat, H, W), jnp.float32)
    w = jax.random.normal(kw, (2 * n_feat, n_feat, 3, 3), jnp.float32) * 0.1

    out = jax.block_until_ready(jax.jit(upsample)(x, w))
    ref = jax.block_until_ready(upsample_ref(x, w))

    assert out.shape == (N, n_feat // 2, 2 * H, 2 * W) and out.dtype == jnp.float32
    np.testing.assert_allclose(np.asarray(out), np.asarray(ref), rtol=1e-3, atol=1e-3)
    print("KERNEL_OK")
</pallas_src>

<mosaic_0001>
module attributes {stable_mosaic.version = 11 : i64} {
  func.func @_conv3x3_mxu_kernel(%arg0: i32, %arg1: memref<1x16x16x8xf32, #tpu.memory_space<vmem>>, %arg2: memref<9x8x16xf32, #tpu.memory_space<vmem>>, %arg3: memref<1x256x16xf32, #tpu.memory_space<vmem>>, %arg4: memref<18x18x8xf32, #tpu.memory_space<vmem>>) attributes {dimension_semantics = [#tpu.dimension_semantics<parallel>], iteration_bounds = array<i64: 2>, scalar_prefetch = 0 : i64, scratch_operands = 1 : i64, tpu.core_type = #tpu.core_type<tc>, window_params = [{transform_indices = @transform_0, window_bounds = array<i64: 1, 16, 16, 8>}, {pipeline_mode = #tpu.pipeline_mode<synchronous>, transform_indices = @transform_1, window_bounds = array<i64: 9, 8, 16>}, {transform_indices = @transform_2, window_bounds = array<i64: 1, 256, 16>}]} {
    %cst = arith.constant 0.000000e+00 : f32
    %0 = vector.broadcast %cst : f32 to vector<18x18x8xf32>
    %c0 = arith.constant 0 : index
    %c0_0 = arith.constant 0 : index
    %c0_1 = arith.constant 0 : index
    %1 = vector.load %arg4[%c0, %c0_0, %c0_1] : memref<18x18x8xf32, #tpu.memory_space<vmem>>, vector<18x18x8xf32>
    tpu.vector_store %arg4[%c0, %c0_0, %c0_1], %0 {strides = array<i32>} : memref<18x18x8xf32, #tpu.memory_space<vmem>>, vector<18x18x8xf32>,
    %c0_2 = arith.constant 0 : index
    %c0_3 = arith.constant 0 : index
    %c0_4 = arith.constant 0 : index
    %c0_5 = arith.constant 0 : index
    %2 = vector.load %arg1[%c0_2, %c0_3, %c0_4, %c0_5] : memref<1x16x16x8xf32, #tpu.memory_space<vmem>>, vector<1x16x16x8xf32>
    %3 = vector.shape_cast %2 : vector<1x16x16x8xf32> to vector<16x16x8xf32>
    %c1 = arith.constant 1 : index
    %c1_6 = arith.constant 1 : index
    %c0_7 = arith.constant 0 : index
    %4 = vector.load %arg4[%c1, %c1_6, %c0_7] : memref<18x18x8xf32, #tpu.memory_space<vmem>>, vector<16x16x8xf32>
    tpu.vector_store %arg4[%c1, %c1_6, %c0_7], %3 {strides = array<i32>} : memref<18x18x8xf32, #tpu.memory_space<vmem>>, vector<16x16x8xf32>,
    %cst_8 = arith.constant 0.000000e+00 : f32
    %5 = vector.broadcast %cst_8 : f32 to vector<256x16xf32>
    %c0_9 = arith.constant 0 : index
    %c0_10 = arith.constant 0 : index
    %c0_11 = arith.constant 0 : index
    %6 = vector.load %arg4[%c0_9, %c0_10, %c0_11] : memref<18x18x8xf32, #tpu.memory_space<vmem>>, vector<16x16x8xf32>
    %7 = vector.shape_cast %6 : vector<16x16x8xf32> to vector<256x8xf32>
    %c0_12 = arith.constant 0 : index
    %c0_13 = arith.constant 0 : index
    %c0_14 = arith.constant 0 : index
    %8 = vector.load %arg2[%c0_12, %c0_13, %c0_14] : memref<9x8x16xf32, #tpu.memory_space<vmem>>, vector<1x8x16xf32>
    %9 = vector.shape_cast %8 : vector<1x8x16xf32> to vector<8x16xf32>
    %cst_15 = arith.constant dense<0.000000e+00> : vector<256x16xf32>
    %10 = tpu.matmul %7, %9, %cst_15 {dimension_numbers = #tpu.dot_dimension_numbers<[1], [0], [0], [1], [0, 0, 1, 1], [], []>} : vector<256x8xf32>, vector<8x16xf32>, vector<256x16xf32> -> vector<256x16xf32>
    %11 = arith.addf %5, %10 : vector<256x16xf32>
    %c0_16 = arith.constant 0 : index
    %c1_17 = arith.constant 1 : index
    %c0_18 = arith.constant 0 : index
    %12 = vector.load %arg4[%c0_16, %c1_17, %c0_18] : memref<18x18x8xf32, #tpu.memory_space<vmem>>, vector<16x16x8xf32>
    %13 = vector.shape_cast %12 : vector<16x16x8xf32> to vector<256x8xf32>
    %c1_19 = arith.constant 1 : index
    %c0_20 = arith.constant 0 : index
    %c0_21 = arith.constant 0 : index
    %14 = vector.load %arg2[%c1_19, %c0_20, %c0_21] : memref<9x8x16xf32, #tpu.memory_space<vmem>>, vector<1x8x16xf32>
    %15 = vector.shape_cast %14 : vector<1x8x16xf32> to vector<8x16xf32>
    %cst_22 = arith.constant dense<0.000000e+00> : vector<256x16xf32>
    %16 = tpu.matmul %13, %15, %cst_22 {dimension_numbers = #tpu.dot_dimension_numbers<[1], [0], [0], [1], [0, 0, 1, 1], [], []>} : vector<256x8xf32>, vector<8x16xf32>, vector<256x16xf32> -> vector<256x16xf32>
    %17 = arith.addf %11, %16 : vector<256x16xf32>
    %c0_23 = arith.constant 0 : index
    %c2 = arith.constant 2 : index
    %c0_24 = arith.constant 0 : index
    %18 = vector.load %arg4[%c0_23, %c2, %c0_24] : memref<18x18x8xf32, #tpu.memory_space<vmem>>, vector<16x16x8xf32>
    %19 = vector.shape_cast %18 : vector<16x16x8xf32> to vector<256x8xf32>
    %c2_25 = arith.constant 2 : index
    %c0_26 = arith.constant 0 : index
    %c0_27 = arith.constant 0 : index
    %20 = vector.load %arg2[%c2_25, %c0_26, %c0_27] : memref<9x8x16xf32, #tpu.memory_space<vmem>>, vector<1x8x16xf32>
    %21 = vector.shape_cast %20 : vector<1x8x16xf32> to vector<8x16xf32>
    %cst_28 = arith.constant dense<0.000000e+00> : vector<256x16xf32>
    %22 = tpu.matmul %19, %21, %cst_28 {dimension_numbers = #tpu.dot_dimension_numbers<[1], [0], [0], [1], [0, 0, 1, 1], [], []>} : vector<256x8xf32>, vector<8x16xf32>, vector<256x16xf32> -> vector<256x16xf32>
    %23 = arith.addf %17, %22 : vector<256x16xf32>
    %c1_29 = arith.constant 1 : index
    %c0_30 = arith.constant 0 : index
    %c0_31 = arith.constant 0 : index
    %24 = vector.load %arg4[%c1_29, %c0_30, %c0_31] : memref<18x18x8xf32, #tpu.memory_space<vmem>>, vector<16x16x8xf32>
    %25 = vector.shape_cast %24 : vector<16x16x8xf32> to vector<256x8xf32>
    %c3 = arith.constant 3 : index
    %c0_32 = arith.constant 0 : index
    %c0_33 = arith.constant 0 : index
    %26 = vector.load %arg2[%c3, %c0_32, %c0_33] : memref<9x8x16xf32, #tpu.memory_space<vmem>>, vector<1x8x16xf32>
    %27 = vector.shape_cast %26 : vector<1x8x16xf32> to vector<8x16xf32>
    %cst_34 = arith.constant dense<0.000000e+00> : vector<256x16xf32>
    %28 = tpu.matmul %25, %27, %cst_34 {dimension_numbers = #tpu.dot_dimension_numbers<[1], [0], [0], [1], [0, 0, 1, 1], [], []>} : vector<256x8xf32>, vector<8x16xf32>, vector<256x16xf32> -> vector<256x16xf32>
    %29 = arith.addf %23, %28 : vector<256x16xf32>
    %c1_35 = arith.constant 1 : index
    %c1_36 = arith.constant 1 : index
    %c0_37 = arith.constant 0 : index
    %30 = vector.load %arg4[%c1_35, %c1_36, %c0_37] : memref<18x18x8xf32, #tpu.memory_space<vmem>>, vector<16x16x8xf32>
    %31 = vector.shape_cast %30 : vector<16x16x8xf32> to vector<256x8xf32>
    %c4 = arith.constant 4 : index
    %c0_38 = arith.constant 0 : index
    %c0_39 = arith.constant 0 : index
    %32 = vector.load %arg2[%c4, %c0_38, %c0_39] : memref<9x8x16xf32, #tpu.memory_space<vmem>>, vector<1x8x16xf32>
    %33 = vector.shape_cast %32 : vector<1x8x16xf32> to vector<8x16xf32>
    %cst_40 = arith.constant dense<0.000000e+00> : vector<256x16xf32>
    %34 = tpu.matmul %31, %33, %cst_40 {dimension_numbers = #tpu.dot_dimension_numbers<[1], [0], [0], [1], [0, 0, 1, 1], [], []>} : vector<256x8xf32>, vector<8x16xf32>, vector<256x16xf32> -> vector<256x16xf32>
    %35 = arith.addf %29, %34 : vector<256x16xf32>
    %c1_41 = arith.constant 1 : index
    %c2_42 = arith.constant 2 : index
    %c0_43 = arith.constant 0 : index
    %36 = vector.load %arg4[%c1_41, %c2_42, %c0_43] : memref<18x18x8xf32, #tpu.memory_space<vmem>>, vector<16x16x8xf32>
    %37 = vector.shape_cast %36 : vector<16x16x8xf32> to vector<256x8xf32>
    %c5 = arith.constant 5 : index
    %c0_44 = arith.constant 0 : index
    %c0_45 = arith.constant 0 : index
    %38 = vector.load %arg2[%c5, %c0_44, %c0_45] : memref<9x8x16xf32, #tpu.memory_space<vmem>>, vector<1x8x16xf32>
    %39 = vector.shape_cast %38 : vector<1x8x16xf32> to vector<8x16xf32>
    %cst_46 = arith.constant dense<0.000000e+00> : vector<256x16xf32>
    %40 = tpu.matmul %37, %39, %cst_46 {dimension_numbers = #tpu.dot_dimension_numbers<[1], [0], [0], [1], [0, 0, 1, 1], [], []>} : vector<256x8xf32>, vector<8x16xf32>, vector<256x16xf32> -> vector<256x16xf32>
    %41 = arith.addf %35, %40 : vector<256x16xf32>
    %c2_47 = arith.constant 2 : index
    %c0_48 = arith.constant 0 : index
    %c0_49 = arith.constant 0 : index
    %42 = vector.load %arg4[%c2_47, %c0_48, %c0_49] : memref<18x18x8xf32, #tpu.memory_space<vmem>>, vector<16x16x8xf32>
    %43 = vector.shape_cast %42 : vector<16x16x8xf32> to vector<256x8xf32>
    %c6 = arith.constant 6 : index
    %c0_50 = arith.constant 0 : index
    %c0_51 = arith.constant 0 : index
    %44 = vector.load %arg2[%c6, %c0_50, %c0_51] : memref<9x8x16xf32, #tpu.memory_space<vmem>>, vector<1x8x16xf32>
    %45 = vector.shape_cast %44 : vector<1x8x16xf32> to vector<8x16xf32>
    %cst_52 = arith.constant dense<0.000000e+00> : vector<256x16xf32>
    %46 = tpu.matmul %43, %45, %cst_52 {dimension_numbers = #tpu.dot_dimension_numbers<[1], [0], [0], [1], [0, 0, 1, 1], [], []>} : vector<256x8xf32>, vector<8x16xf32>, vector<256x16xf32> -> vector<256x16xf32>
    %47 = arith.addf %41, %46 : vector<256x16xf32>
    %c2_53 = arith.constant 2 : index
    %c1_54 = arith.constant 1 : index
    %c0_55 = arith.constant 0 : index
    %48 = vector.load %arg4[%c2_53, %c1_54, %c0_55] : memref<18x18x8xf32, #tpu.memory_space<vmem>>, vector<16x16x8xf32>
    %49 = vector.shape_cast %48 : vector<16x16x8xf32> to vector<256x8xf32>
    %c7 = arith.constant 7 : index
    %c0_56 = arith.constant 0 : index
    %c0_57 = arith.constant 0 : index
    %50 = vector.load %arg2[%c7, %c0_56, %c0_57] : memref<9x8x16xf32, #tpu.memory_space<vmem>>, vector<1x8x16xf32>
    %51 = vector.shape_cast %50 : vector<1x8x16xf32> to vector<8x16xf32>
    %cst_58 = arith.constant dense<0.000000e+00> : vector<256x16xf32>
    %52 = tpu.matmul %49, %51, %cst_58 {dimension_numbers = #tpu.dot_dimension_numbers<[1], [0], [0], [1], [0, 0, 1, 1], [], []>} : vector<256x8xf32>, vector<8x16xf32>, vector<256x16xf32> -> vector<256x16xf32>
    %53 = arith.addf %47, %52 : vector<256x16xf32>
    %c2_59 = arith.constant 2 : index
    %c2_60 = arith.constant 2 : index
    %c0_61 = arith.constant 0 : index
    %54 = vector.load %arg4[%c2_59, %c2_60, %c0_61] : memref<18x18x8xf32, #tpu.memory_space<vmem>>, vector<16x16x8xf32>
    %55 = vector.shape_cast %54 : vector<16x16x8xf32> to vector<256x8xf32>
    %c8 = arith.constant 8 : index
    %c0_62 = arith.constant 0 : index
    %c0_63 = arith.constant 0 : index
    %56 = vector.load %arg2[%c8, %c0_62, %c0_63] : memref<9x8x16xf32, #tpu.memory_space<vmem>>, vector<1x8x16xf32>
    %57 = vector.shape_cast %56 : vector<1x8x16xf32> to vector<8x16xf32>
    %cst_64 = arith.constant dense<0.000000e+00> : vector<256x16xf32>
    %58 = tpu.matmul %55, %57, %cst_64 {dimension_numbers = #tpu.dot_dimension_numbers<[1], [0], [0], [1], [0, 0, 1, 1], [], []>} : vector<256x8xf32>, vector<8x16xf32>, vector<256x16xf32> -> vector<256x16xf32>
    %59 = arith.addf %53, %58 : vector<256x16xf32>
    %c0_65 = arith.constant 0 : index
    %c0_66 = arith.constant 0 : index
    %c0_67 = arith.constant 0 : index
    %60 = vector.load %arg3[%c0_65, %c0_66, %c0_67] : memref<1x256x16xf32, #tpu.memory_space<vmem>>, vector<1x256x16xf32>
    %61 = vector.shape_cast %60 : vector<1x256x16xf32> to vector<256x16xf32>
    %62 = vector.shape_cast %59 : vector<256x16xf32> to vector<1x256x16xf32>
    tpu.vector_store %arg3[%c0_65, %c0_66, %c0_67], %62 {strides = array<i32>} : memref<1x256x16xf32, #tpu.memory_space<vmem>>, vector<1x256x16xf32>,
    return
  }
  func.func @transform_0(%arg0: i32) -> (i32, i32, i32, i32) {
    %c0_i32 = arith.constant 0 : i32
    %c0_i32_0 = arith.constant 0 : i32
    %c0_i32_1 = arith.constant 0 : i32
    %c0_i32_2 = arith.constant 0 : i32
    return %arg0, %c0_i32, %c0_i32_0, %c0_i32_1 : i32, i32, i32, i32
  }
  func.func @transform_1(%arg0: i32) -> (i32, i32, i32) {
    %c0_i32 = arith.constant 0 : i32
    %c0_i32_0 = arith.constant 0 : i32
    %c0_i32_1 = arith.constant 0 : i32
    %c0_i32_2 = arith.constant 0 : i32
    return %c0_i32, %c0_i32_0, %c0_i32_1 : i32, i32, i32
  }
  func.func @transform_2(%arg0: i32) -> (i32, i32, i32) {
    %c0_i32 = arith.constant 0 : i32
    %c0_i32_0 = arith.constant 0 : i32
    %c0_i32_1 = arith.constant 0 : i32
    return %arg0, %c0_i32, %c0_i32_0 : i32, i32, i32
  }
}

</mosaic_0001>

<bundles_post_ra>
// kernel: upsample.1
= control target key start
LH: loop header
LB: loop body
LE: loop exit
PB: predicated region body
PF: predicated region fallthrough
CT: control target
= control target key end

     0   :  { %s4863_s9 = smov 0   ;;  %s6343_s0 = inlined_call_operand.vmem [shape: f32[2,16,16,8], index: 0, kind: input, shape index: {}]   ;;  %s6344_s1 = inlined_call_operand.vmem [shape: f32[9,8,16], index: 1, kind: input, shape index: {}]   ;;  %s6345_s2 = inlined_call_operand.vmem [shape: f32[2,256,16], index: 2, kind: output, shape index: {}]  }
   0x1 LB: > { %s3772_s10 = sadd.s32 4294967295, %s4845_s9   ;;  %p3776_p0 = scmp.ge.s32.totalorder %s4845_s9, 1  ;;  %s4845_s9 = sphi %s4863_s9, %s12_s9  }
   0x2   : > { %p112_p1 = scmp.lt.s32.totalorder %s4845_s9, 3 }
   0x4   : > { %p113_p2 = pnand %p3776_p0, %p112_p1 }
   0x6   : > { %116 = sbr.rel (%p113_p2) target bundleno = 532 (0x214), region = 28 }
   0xb   : > { %v4874_v0 = vld [vmem:[%s6344_s1 + $0x8] sm:$0xff]  ;;  %vm144_vm0 = vcmask 64512   ;;  %p4878_p3 = scmp.lt.s32.totalorder %s3772_s10, 1  ;;  %v4885_v1 = vld [vmem:[%s6344_s1] sm:$0xff]  ;;  %vm147_vm1 = vcmask 58368   ;;  %v4847_v2 = vmov 0.0  }
   0xc   : > { %4828 = vmatprep.subr.mxu1 %v4874_v0  ;;  %4378 = vmatprep.subr.mxu0 %v4874_v0  ;;  %145 = vst.msk [vmem:[#allocation2] sm:$0xff] %vm144_vm0, %v4847_v2  ;;  %146 = vst.msk [vmem:[#allocation2 + $0x8] sm:$0xff] %vm144_vm0, %v4847_v2  ;;  %v3846_v3 = vld [vmem:[%s6344_s1 + $0x10] sm:$0xff]  ;;  %v4975_v10 = vld [vmem:[%s6344_s1 + $0x20] sm:$0xff]  ;;  %vm3684_vm2 = vcmask 130048  }
   0xd   : > { %149 = vst.msk [vmem:[#allocation2 + $0x18] sm:$0xff] %vm144_vm0, %v4847_v2  ;;  %150 = vst.msk [vmem:[#allocation2 + $0x20] sm:$0xff] %vm144_vm0, %v4847_v2  ;;  %4829 = vmatpush3.msra.mxu1 %v4874_v0  ;;  %4379 = vmatpush3.msra.mxu0 %v4874_v0  ;;  %s6564_s10 = smov (!%p4878_p3, %s3772_s10), 1  ;;  %v5032_v34 = vld [vmem:[%s6344_s1 + $0x18] sm:$0xff] }
   0xe   : > { %152 = vst.msk [vmem:[#allocation2 + $0x30] sm:$0xff] %vm144_vm0, %v4847_v2  ;;  %153 = vst.msk [vmem:[#allocation2 + $0x38] sm:$0xff] %vm144_vm0, %v4847_v2  ;;  %4428 = vmatprep.subr.mxu1 %v4885_v1  ;;  %4478 = vmatprep.subr.mxu0 %v3846_v3  ;;  %s4079_s18 = sshll.u32 %s6564_s10, 8 }
   0xf   : > { %155 = vst.msk [vmem:[#allocation2 + $0x48] sm:$0xff] %vm144_vm0, %v4847_v2  ;;  %156 = vst.msk [vmem:[#allocation2 + $0x50] sm:$0xff] %vm144_vm0, %v4847_v2  ;;  %s4961_s21 = scalar_lea.vmem %s6343_s0, %s4079_s18  ;;  %s6188_s8 = scalar_lea.vmem %s6345_s2, %s4079_s18 }
  0x10   : > { %158 = vst.msk [vmem:[#allocation2 + $0x60] sm:$0xff] %vm144_vm0, %v4847_v2  ;;  %159 = vst.msk [vmem:[#allocation2 + $0x68] sm:$0xff] %vm144_vm0, %v4847_v2  ;;  %v214_v4 = vld [vmem:[%s4961_s21 + $0x70] sm:$0xff]  ;;  %v215_v5 = vld [vmem:[%s4961_s21 + $0x78] sm:$0xff] }
  0x11   : > { %161 = vst.msk [vmem:[#allocation2 + $0x78] sm:$0xff] %vm144_vm0, %v4847_v2  ;;  %162 = vst.msk [vmem:[#allocation2 + $0x80] sm:$0xff] %vm144_vm0, %v4847_v2  ;;  %v200_v6 = vld [vmem:[%s4961_s21] sm:$0xff]  ;;  %v201_v8 = vld [vmem:[%s4961_s21 + $0x8] sm:$0xff] }
  0x12   : > { %164 = vst.msk [vmem:[#allocation2 + $0x90] sm:$0xff] %vm144_vm0, %v4847_v2  ;;  %165 = vst.msk [vmem:[#allocation2 + $0x98] sm:$0xff] %vm144_vm0, %v4847_v2  ;;  %v216_v7 = vld [vmem:[%s4961_s21 + $0x80] sm:$0xff]  ;;  %v217_v9 = vld [vmem:[%s4961_s21 + $0x88] sm:$0xff] }
  0x13   : > { %167 = vst.msk [vmem:[#allocation2 + $0xa8] sm:$0xff] %vm144_vm0, %v4847_v2  ;;  %168 = vst.msk [vmem:[#allocation2 + $0xb0] sm:$0xff] %vm144_vm0, %v4847_v2  ;;  %v298_v11 = vld [vmem:[#allocation2 + $0x1] sm:$0xff]  ;;  %v202_v13 = vld [vmem:[%s4961_s21 + $0x10] sm:$0xff] }
  0x14   : > { %170 = vst.msk [vmem:[#allocation2 + $0xc0] sm:$0xff] %vm144_vm0, %v4847_v2  ;;  %171 = vst.msk [vmem:[#allocation2 + $0xc8] sm:$0xff] %vm144_vm0, %v4847_v2  ;;  %4380 = vmatprep.mubr.msk.f32.mxu0 %vm144_vm0, %v298_v11  ;;  %v218_v14 = vld [vmem:[%s4961_s21 + $0x90] sm:$0xff]  ;;  %v203_v15 = vld [vmem:[%s4961_s21 + $0x18] sm:$0xff] }
  0x15   : > { %173 = vst.msk [vmem:[#allocation2 + $0xd8] sm:$0xff] %vm144_vm0, %v4847_v2  ;;  %174 = vst.msk [vmem:[#allocation2 + $0xe0] sm:$0xff] %vm144_vm0, %v4847_v2  ;;  %v219_v16 = vld [vmem:[%s4961_s21 + $0x98] sm:$0xff]  ;;  %v204_v17 = vld [vmem:[%s4961_s21 + $0x20] sm:$0xff] }
  0x16   : > { %176 = vst.msk [vmem:[#allocation2 + $0xf0] sm:$0xff] %vm144_vm0, %v4847_v2  ;;  %177 = vst.msk [vmem:[#allocation2 + $0xf8] sm:$0xff] %vm144_vm0, %v4847_v2  ;;  %v220_v18 = vld [vmem:[%s4961_s21 + $0xa0] sm:$0xff]  ;;  %v205_v19 = vld [vmem:[%s4961_s21 + $0x28] sm:$0xff] }
  0x17   : > { %179 = vst.msk [vmem:[#allocation2 + $0x108] sm:$0xff] %vm144_vm0, %v4847_v2  ;;  %180 = vst.msk [vmem:[#allocation2 + $0x110] sm:$0xff] %vm144_vm0, %v4847_v2  ;;  %v221_v20 = vld [vmem:[%s4961_s21 + $0xa8] sm:$0xff]  ;;  %v206_v21 = vld [vmem:[%s4961_s21 + $0x30] sm:$0xff] }
  0x18   : > { %182 = vst.msk [vmem:[#allocation2 + $0x120] sm:$0xff] %vm144_vm0, %v4847_v2  ;;  %183 = vst.msk [vmem:[#allocation2 + $0x128] sm:$0xff] %vm144_vm0, %v4847_v2  ;;  %v222_v22 = vld [vmem:[%s4961_s21 + $0xb0] sm:$0xff]  ;;  %v207_v23 = vld [vmem:[%s4961_s21 + $0x38] sm:$0xff] }
  0x19   : > { %185 = vst.msk [vmem:[#allocation2 + $0x138] sm:$0xff] %vm144_vm0, %v4847_v2  ;;  %186 = vst.msk [vmem:[#allocation2 + $0x140] sm:$0xff] %vm144_vm0, %v4847_v2  ;;  %v223_v24 = vld [vmem:[%s4961_s21 + $0xb8] sm:$0xff]  ;;  %v208_v25 = vld [vmem:[%s4961_s21 + $0x40] sm:$0xff] }
  0x1a   : > { %188 = vst.msk [vmem:[#allocation2 + $0x150] sm:$0xff] %vm144_vm0, %v4847_v2  ;;  %189 = vst.msk [vmem:[#allocation2 + $0x158] sm:$0xff] %vm144_vm0, %v4847_v2  ;;  %v224_v26 = vld [vmem:[%s4961_s21 + $0xc0] sm:$0xff]  ;;  %v209_v27 = vld [vmem:[%s4961_s21 + $0x48] sm:$0xff] }
  0x1b   : > { %191 = vst.msk [vmem:[#allocation2 + $0x168] sm:$0xff] %vm144_vm0, %v4847_v2  ;;  %192 = vst.msk [vmem:[#allocation2 + $0x170] sm:$0xff] %vm144_vm0, %v4847_v2  ;;  %v225_v28 = vld [vmem:[%s4961_s21 + $0xc8] sm:$0xff]  ;;  %v210_v36 = vld [vmem:[%s4961_s21 + $0x50] sm:$0xff] }
  0x1c   : > { %194 = vst.msk [vmem:[#allocation2 + $0x180] sm:$0xff] %vm144_vm0, %v4847_v2  ;;  %195 = vst.msk [vmem:[#allocation2 + $0x188] sm:$0xff] %vm144_vm0, %v4847_v2  ;;  %v226_v37 = vld [vmem:[%s4961_s21 + $0xd0] sm:$0xff]  ;;  %v211_v46 = vld [vmem:[%s4961_s21 + $0x58] sm:$0xff] }
  0x1d   : > { %197 = vst.msk [vmem:[#allocation2 + $0x198] sm:$0xff] %vm144_vm0, %v4847_v2  ;;  %198 = vst.msk [vmem:[#allocation2 + $0x1a0] sm:$0xff] %vm144_vm0, %v4847_v2  ;;  %v227_v47 = vld [vmem:[%s4961_s21 + $0xd8] sm:$0xff]  ;;  %v212_v48 = vld [vmem:[%s4961_s21 + $0x60] sm:$0xff] }
  0x1e   : > { %148 = vst.msk [vmem:[#allocation2 + $0x10] sm:$0x3] %vm147_vm1, %v4847_v2  ;;  %151 = vst.msk [vmem:[#allocation2 + $0x28] sm:$0x3] %vm147_vm1, %v4847_v2  ;;  %v228_v49 = vld [vmem:[%s4961_s21 + $0xe0] sm:$0xff]  ;;  %v213_v50 = vld [vmem:[%s4961_s21 + $0x68] sm:$0xff] }
  0x1f   : > { %154 = vst.msk [vmem:[#allocation2 + $0x40] sm:$0x3] %vm147_vm1, %v4847_v2  ;;  %157 = vst.msk [vmem:[#allocation2 + $0x58] sm:$0x3] %vm147_vm1, %v4847_v2  ;;  %v229_v51 = vld [vmem:[%s4961_s21 + $0xe8] sm:$0xff] }
  0x20   : > { %160 = vst.msk [vmem:[#allocation2 + $0x70] sm:$0x3] %vm147_vm1, %v4847_v2  ;;  %163 = vst.msk [vmem:[#allocation2 + $0x88] sm:$0x3] %vm147_vm1, %v4847_v2 }
  0x21   : > { %166 = vst.msk [vmem:[#allocation2 + $0xa0] sm:$0x3] %vm147_vm1, %v4847_v2  ;;  %169 = vst.msk [vmem:[#allocation2 + $0xb8] sm:$0x3] %vm147_vm1, %v4847_v2 }
  0x22   : > { %172 = vst.msk [vmem:[#allocation2 + $0xd0] sm:$0x3] %vm147_vm1, %v4847_v2  ;;  %175 = vst.msk [vmem:[#allocation2 + $0xe8] sm:$0x3] %vm147_vm1, %v4847_v2 }
  0x23   : > { %178 = vst.msk [vmem:[#allocation2 + $0x100] sm:$0x3] %vm147_vm1, %v4847_v2  ;;  %181 = vst.msk [vmem:[#allocation2 + $0x118] sm:$0x3] %vm147_vm1, %v4847_v2 }
  0x24   : > { %184 = vst.msk [vmem:[#allocation2 + $0x130] sm:$0x3] %vm147_vm1, %v4847_v2  ;;  %187 = vst.msk [vmem:[#allocation2 + $0x148] sm:$0x3] %vm147_vm1, %v4847_v2 }
  0x25   : > { %190 = vst.msk [vmem:[#allocation2 + $0x160] sm:$0x3] %vm147_vm1, %v4847_v2  ;;  %193 = vst.msk [vmem:[#allocation2 + $0x178] sm:$0x3] %vm147_vm1, %v4847_v2  ;;  %v299_v12 = vld [vmem:[#allocation2 + $0x9] sm:$0xff] }
  0x26   : > { %196 = vst.msk [vmem:[#allocation2 + $0x190] sm:$0x3] %vm147_vm1, %v4847_v2  ;;  %199 = vst.msk [vmem:[#allocation2 + $0x1a8] sm:$0x3] %vm147_vm1, %v4847_v2  ;;  %4381 = vmatmul.mubr.msk.f32.vlgmr.msra.gmra.mxu0 %vm144_vm0, %v299_v12 }
  0x27   : > { %247 = vst.msk [vmem:[#allocation2 + $0xc1] sm:$0xff] %vm144_vm0, %v214_v4  ;;  %248 = vst.msk [vmem:[#allocation2 + $0xc9] sm:$0xff] %vm144_vm0, %v215_v5  ;;  %4479 = vmatpush3.msra.mxu0 %v3846_v3  ;;  %v974_v3 = vld [vmem:[#allocation2 + $0x2] sm:$0xff]  ;;  %v975_v5 = vld [vmem:[#allocation2 + $0xa] sm:$0xff] }
  0x28   : > { %233 = vst.msk [vmem:[#allocation2 + $0x19] sm:$0xff] %vm144_vm0, %v200_v6  ;;  %249 = vst.msk [vmem:[#allocation2 + $0xd9] sm:$0xff] %vm144_vm0, %v216_v7  ;;  %4578 = vmatprep.subr.mxu0 %v4975_v10  ;;  %v265_v6 = vld [vmem:[#allocation2] sm:$0xff] }
  0x29   : > { %234 = vst.msk [vmem:[#allocation2 + $0x21] sm:$0xff] %vm144_vm0, %v201_v8  ;;  %250 = vst.msk [vmem:[#allocation2 + $0xe1] sm:$0xff] %vm144_vm0, %v217_v9  ;;  %v5162_v8 = vld [vmem:[%s6344_s1 + $0x30] sm:$0xff]  ;;  %v266_v9 = vld [vmem:[#allocation2 + $0x8] sm:$0xff] }
  0x2a   : > { %235 = vst.msk [vmem:[#allocation2 + $0x31] sm:$0xff] %vm144_vm0, %v202_v13  ;;  %251 = vst.msk [vmem:[#allocation2 + $0xf1] sm:$0xff] %vm144_vm0, %v218_v14  ;;  %v5181_v14 = vld [vmem:[%s6344_s1 + $0x28] sm:$0xff] }
  0x2b   : > { %236 = vst.msk [vmem:[#allocation2 + $0x39] sm:$0xff] %vm144_vm0, %v203_v15  ;;  %252 = vst.msk [vmem:[#allocation2 + $0xf9] sm:$0xff] %vm144_vm0, %v219_v16  ;;  %v231_v15 = vld [vmem:[%s4961_s21 + $0xf8] sm:$0xff] }
  0x2c   : > { %237 = vst.msk [vmem:[#allocation2 + $0x49] sm:$0xff] %vm144_vm0, %v204_v17  ;;  %253 = vst.msk [vmem:[#allocation2 + $0x109] sm:$0xff] %vm144_vm0, %v220_v18 }
  0x2d   : > { %238 = vst.msk [vmem:[#allocation2 + $0x51] sm:$0xff] %vm144_vm0, %v205_v19  ;;  %254 = vst.msk [vmem:[#allocation2 + $0x111] sm:$0xff] %vm144_vm0, %v221_v20 }
  0x2e   : > { %239 = vst.msk [vmem:[#allocation2 + $0x61] sm:$0xff] %vm144_vm0, %v206_v21  ;;  %255 = vst.msk [vmem:[#allocation2 + $0x121] sm:$0xff] %vm144_vm0, %v222_v22  ;;  %v5012_v29 = vld [vmem:[#allocation2 + $0xc1] sm:$0xff]  ;;  %v5014_v30 = vld [vmem:[#allocation2 + $0xc9] sm:$0xff] }
  0x2f   : > { %240 = vst.msk [vmem:[#allocation2 + $0x69] sm:$0xff] %vm144_vm0, %v207_v23  ;;  %256 = vst.msk [vmem:[#allocation2 + $0x129] sm:$0xff] %vm144_vm0, %v223_v24  ;;  %v5016_v31 = vld [vmem:[#allocation2 + $0x19] sm:$0xff]  ;;  %4404 = vmatprep.mubr.msk.f32.mxu1 %vm144_vm0, %v5012_v29 }
  0x30   : > { %241 = vst.msk [vmem:[#allocation2 + $0x79] sm:$0xff] %vm144_vm0, %v208_v25  ;;  %257 = vst.msk [vmem:[#allocation2 + $0x139] sm:$0xff] %vm144_vm0, %v224_v26  ;;  %4383 = vmatprep.mubr.msk.f32.mxu0 %vm144_vm0, %v5016_v31  ;;  %v5025_v32 = vld [vmem:[#allocation2 + $0xd9] sm:$0xff]  ;;  %v5027_v33 = vld [vmem:[#allocation2 + $0x21] sm:$0xff]  ;;  %4405 = vmatmul.mubr.msk.f32.vlgmr.msra.gmra.mxu1 %vm144_vm0, %v5014_v30 }
  0x31   : > { %242 = vst.msk [vmem:[#allocation2 + $0x81] sm:$0xff] %vm144_vm0, %v209_v27  ;;  %258 = vst.msk [vmem:[#allocation2 + $0x141] sm:$0xff] %vm144_vm0, %v225_v28  ;;  %4384 = vmatmul.mubr.msk.f32.gmra.mxu0 %vm144_vm0, %v5027_v33  ;;  %v5038_v35 = vld [vmem:[#allocation2 + $0x31] sm:$0xff]  ;;  %4429 = vmatpush3.msra.mxu1 %v4885_v1  ;;  %v5045_v38 = vld [vmem:[#allocation2 + $0xe1] sm:$0xff] }
  0x32   : > { %4407 = vmatprep.mubr.msk.f32.mxu1 %vm144_vm0, %v5025_v32  ;;  %v5047_v39 = vld [vmem:[#allocation2 + $0x39] sm:$0xff]  ;;  %243 = vst.msk [vmem:[#allocation2 + $0x91] sm:$0xff] %vm144_vm0, %v210_v36  ;;  %259 = vst.msk [vmem:[#allocation2 + $0x151] sm:$0xff] %vm144_vm0, %v226_v37  ;;  %4386 = vmatprep.mubr.msk.f32.mxu0 %vm144_vm0, %v5038_v35  ;;  %v5053_v40 = vld [vmem:[#allocation2 + $0xf1] sm:$0xff] }
  0x33   : > { %v5055_v41 = vld [vmem:[#allocation2 + $0x49] sm:$0xff]  ;;  %4528 = vmatprep.subr.mxu1 %v5032_v34  ;;  %v5062_v42 = vld [vmem:[#allocation2 + $0xf9] sm:$0xff]  ;;  %244 = vst.msk [vmem:[#allocation2 + $0x99] sm:$0xff] %vm144_vm0, %v211_v46  ;;  %260 = vst.msk [vmem:[#allocation2 + $0x159] sm:$0xff] %vm144_vm0, %v227_v47 }
  0x34   : > { %4408 = vmatmul.mubr.msk.f32.gmra.mxu1 %vm144_vm0, %v5045_v38  ;;  %v5068_v43 = vld [vmem:[#allocation2 + $0x109] sm:$0xff]  ;;  %v5070_v44 = vld [vmem:[#allocation2 + $0x51] sm:$0xff]  ;;  %245 = vst.msk [vmem:[#allocation2 + $0xa9] sm:$0xff] %vm144_vm0, %v212_v48  ;;  %261 = vst.msk [vmem:[#allocation2 + $0x169] sm:$0xff] %vm144_vm0, %v228_v49 }
  0x35   : > { %4387 = vmatmul.mubr.msk.f32.gmra.mxu0 %vm144_vm0, %v5047_v39  ;;  %4410 = vmatprep.mubr.msk.f32.mxu1 %vm144_vm0, %v5053_v40  ;;  %v5072_v45 = vld [vmem:[#allocation2 + $0x61] sm:$0xff]  ;;  %246 = vst.msk [vmem:[#allocation2 + $0xb1] sm:$0xff] %vm144_vm0, %v213_v50  ;;  %262 = vst.msk [vmem:[#allocation2 + $0x171] sm:$0xff] %vm144_vm0, %v229_v51  ;;  %v5092_v52 = vld [vmem:[#allocation2 + $0x111] sm:$0xff] }
  0x36   : > { %4389 = vmatprep.mubr.msk.f32.mxu0 %vm144_vm0, %v5055_v41  ;;  %v5096_v53 = vld [vmem:[#allocation2 + $0x69] sm:$0xff]  ;;  %v5098_v54 = vld [vmem:[#allocation2 + $0x121] sm:$0xff]  ;;  %v5171_v12 = vld [vmem:[#allocation2 + $0x18] sm:$0xff]  ;;  %264 = vst.msk [vmem:[#allocation2 + $0x189] sm:$0xff] %vm144_vm0, %v231_v15 }
  0x37   : > { %v5100_v55 = vld [vmem:[#allocation2 + $0x79] sm:$0xff]  ;;  %v5108_v56 = vld [vmem:[#allocation2 + $0x129] sm:$0xff] }
  0x38   : > { %4411 = vmatmul.mubr.msk.f32.gmra.mxu1 %vm144_vm0, %v5062_v42  ;;  %v5112_v57 = vld [vmem:[#allocation2 + $0x81] sm:$0xff]  ;;  %v5114_v58 = vld [vmem:[#allocation2 + $0x139] sm:$0xff]  ;;  %v5197_v18 = vld [vmem:[#allocation2 + $0x30] sm:$0xff] }
  0x39   : > { %4390 = vmatmul.mubr.msk.f32.gmra.mxu0 %vm144_vm0, %v5070_v44  ;;  %4413 = vmatprep.mubr.msk.f32.mxu1 %vm144_vm0, %v5068_v43  ;;  %v5116_v59 = vld [vmem:[#allocation2 + $0x91] sm:$0xff]  ;;  %v5124_v60 = vld [vmem:[#allocation2 + $0x141] sm:$0xff] }
  0x3a   : > { %4392 = vmatprep.mubr.msk.f32.mxu0 %vm144_vm0, %v5072_v45  ;;  %v5128_v61 = vld [vmem:[#allocation2 + $0x99] sm:$0xff]  ;;  %v5130_v62 = vld [vmem:[#allocation2 + $0x151] sm:$0xff]  ;;  %v5169_v11 = vld [vmem:[#allocation2 + $0x22] sm:$0xff] }
  0x3b   : > { %v5132_v63 = vld [vmem:[#allocation2 + $0xa9] sm:$0xff]  ;;  %v5140_v0 = vld [vmem:[#allocation2 + $0x159] sm:$0xff]  ;;  %6404 = vst [vmem:[#allocation4_spill] sm:$0xff] %v5169_v11 }
  0x3c   : > { %4414 = vmatmul.mubr.msk.f32.gmra.mxu1 %vm144_vm0, %v5092_v52  ;;  %v5144_v1 = vld [vmem:[#allocation2 + $0xb1] sm:$0xff]  ;;  %v5146_v2 = vld [vmem:[#allocation2 + $0x169] sm:$0xff]  ;;  %v5157_v7 = vld [vmem:[#allocation2 + $0x1a] sm:$0xff] }
  0x3d   : > { %4393 = vmatmul.mubr.msk.f32.gmra.mxu0 %vm144_vm0, %v5096_v53  ;;  %4416 = vmatprep.mubr.msk.f32.mxu1 %vm144_vm0, %v5098_v54  ;;  %v5154_v4 = vld [vmem:[#allocation2 + $0x171] sm:$0xff]  ;;  %6403 = vst [vmem:[#allocation3_spill] sm:$0xff] %v5157_v7  ;;  %v5191_v16 = vld [vmem:[#allocation2 + $0x20] sm:$0xff]  ;;  %v5216_v22 = vld [vmem:[#allocation2 + $0x48] sm:$0xff] }
  0x3e   : > { %4395 = vmatprep.mubr.msk.f32.mxu0 %vm144_vm0, %v5100_v55  ;;  %v5176_v13 = vld [vmem:[#allocation2 + $0x32] sm:$0xff]  ;;  %v5193_v17 = vld [vmem:[#allocation2 + $0x3a] sm:$0xff]  ;;  %v5201_v19 = vld [vmem:[#allocation2 + $0x4a] sm:$0xff] }
  0x3f   : > { %6405 = vst [vmem:[#allocation5_spill] sm:$0xff] %v5176_v13  ;;  %6406 = vst [vmem:[#allocation6_spill] sm:$0xff] %v5193_v17  ;;  %v5210_v20 = vld [vmem:[#allocation2 + $0x38] sm:$0xff]  ;;  %v5218_v23 = vld [vmem:[#allocation2 + $0x62] sm:$0xff] }
  0x40   : > { %4417 = vmatmul.mubr.msk.f32.gmra.mxu1 %vm144_vm0, %v5108_v56  ;;  %6407 = vst [vmem:[#allocation7_spill] sm:$0xff] %v5201_v19  ;;  %v5214_v21 = vld [vmem:[#allocation2 + $0x52] sm:$0xff]  ;;  %6409 = vst [vmem:[#allocation9_spill] sm:$0xff] %v5218_v23  ;;  %v5230_v25 = vld [vmem:[#allocation2 + $0x6a] sm:$0xff] }
  0x41   : > { %4396 = vmatmul.mubr.msk.f32.gmra.mxu0 %vm144_vm0, %v5112_v57  ;;  %4419 = vmatprep.mubr.msk.f32.mxu1 %vm144_vm0, %v5114_v58  ;;  %6408 = vst [vmem:[#allocation8_spill] sm:$0xff] %v5214_v21  ;;  %v5226_v24 = vld [vmem:[#allocation2 + $0x50] sm:$0xff]  ;;  %6410 = vst [vmem:[#allocation10_spill] sm:$0xff] %v5230_v25  ;;  %v5232_v26 = vld [vmem:[#allocation2 + $0x60] sm:$0xff] }
  0x42   : > { %4398 = vmatprep.mubr.msk.f32.mxu0 %vm144_vm0, %v5116_v59  ;;  %v5234_v27 = vld [vmem:[#allocation2 + $0x7a] sm:$0xff]  ;;  %v5242_v28 = vld [vmem:[#allocation2 + $0x68] sm:$0xff]  ;;  %v5250_v37 = vld [vmem:[#allocation2 + $0x92] sm:$0xff] }
  0x43   : > { %6411 = vst [vmem:[#allocation11_spill] sm:$0xff] %v5234_v27  ;;  %v5248_v36 = vld [vmem:[#allocation2 + $0x78] sm:$0xff]  ;;  %6413 = vst [vmem:[#allocation13_spill] sm:$0xff] %v5250_v37  ;;  %v5258_v46 = vld [vmem:[#allocation2 + $0x80] sm:$0xff] }
  0x44   : > { %4420 = vmatmul.mubr.msk.f32.gmra.mxu1 %vm144_vm0, %v5124_v60  ;;  %v5262_v47 = vld [vmem:[#allocation2 + $0x9a] sm:$0xff]  ;;  %v5264_v48 = vld [vmem:[#allocation2 + $0x90] sm:$0xff] }
  0x45   : > { %4399 = vmatmul.mubr.msk.f32.gmra.mxu0 %vm144_vm0, %v5128_v61  ;;  %4422 = vmatprep.mubr.msk.f32.mxu1 %vm144_vm0, %v5130_v62  ;;  %6414 = vst [vmem:[#allocation14_spill] sm:$0xff] %v5262_v47  ;;  %v5266_v49 = vld [vmem:[#allocation2 + $0xaa] sm:$0xff]  ;;  %v5274_v50 = vld [vmem:[#allocation2 + $0x98] sm:$0xff] }
  0x46   : > { %4401 = vmatprep.mubr.msk.f32.mxu0 %vm144_vm0, %v5132_v63  ;;  %6415 = vst [vmem:[#allocation15_spill] sm:$0xff] %v5266_v49  ;;  %v5278_v51 = vld [vmem:[#allocation2 + $0xb2] sm:$0xff]  ;;  %v5298_v15 = vld [vmem:[#allocation2 + $0xda] sm:$0xff] }
  0x47   : > { %6416 = vst [vmem:[#allocation16_spill] sm:$0xff] %v5278_v51  ;;  %6419 = vst [vmem:[#allocation19_spill] sm:$0xff] %v5298_v15 }
  0x48   : > { %4423 = vmatmul.mubr.msk.f32.gmra.mxu1 %vm144_vm0, %v5140_v0 }
  0x49   : > { %4402 = vmatmul.mubr.msk.f32.gmra.mxu0 %vm144_vm0, %v5144_v1  ;;  %4425 = vmatprep.mubr.msk.f32.mxu1 %vm144_vm0, %v5146_v2 }
  0x4a   : > { %4480 = vmatprep.mubr.msk.f32.mxu0 %vm144_vm0, %v974_v3  ;;  %v5280_v3 = vld [vmem:[#allocation2 + $0xa8] sm:$0xff] }
  0x4c   : > { %4426 = vmatmul.mubr.msk.f32.gmra.mxu1 %vm144_vm0, %v5154_v4 }
  0x4d   : > { %4481 = vmatmul.mubr.msk.f32.vlgmr.msra.gmra.mxu0 %vm144_vm0, %v975_v5  ;;  %4430 = vmatprep.mubr.msk.f32.mxu1 %vm144_vm0, %v265_v6  ;;  %v5282_v5 = vld [vmem:[#allocation2 + $0xc2] sm:$0xff]  ;;  %v5290_v6 = vld [vmem:[#allocation2 + $0xb0] sm:$0xff] }
  0x4e   : > { %4579 = vmatpush3.msra.mxu0 %v4975_v10  ;;  %4483 = vmatprep.mubr.msk.f32.mxu0 %vm144_vm0, %v5157_v7  ;;  %v230_v10 = vld [vmem:[%s4961_s21 + $0xf0] sm:$0xff]  ;;  %6417 = vst [vmem:[#allocation17_spill] sm:$0xff] %v5282_v5  ;;  %v5408_v7 = vld [vmem:[#allocation2 + $0x168] sm:$0xff] }
  0x4f   : > { %4678 = vmatprep.subr.mxu0 %v5162_v8  ;;  %263 = vst.msk [vmem:[#allocation2 + $0x181] sm:$0xff] %vm144_vm0, %v230_v10  ;;  %v5296_v10 = vld [vmem:[#allocation2 + $0xc0] sm:$0xff] }
  0x50   : > { %4431 = vmatmul.mubr.msk.f32.vlgmr.msra.gmra.mxu1 %vm144_vm0, %v266_v9  ;;  %v5294_v9 = vld [vmem:[#allocation2 + $0xca] sm:$0xff] }
  0x51   : > { %4484 = vmatmul.mubr.msk.f32.gmra.mxu0 %vm144_vm0, %v5169_v11  ;;  %4529 = vmatpush3.msra.mxu1 %v5032_v34  ;;  %v5246_v34 = vld [vmem:[#allocation2 + $0x82] sm:$0xff]  ;;  %6418 = vst [vmem:[#allocation18_spill] sm:$0xff] %v5294_v9  ;;  %v5394_v11 = vld [vmem:[#allocation2 + $0x16a] sm:$0xff] }
  0x52   : > { %4433 = vmatprep.mubr.msk.f32.mxu1 %vm144_vm0, %v5171_v12  ;;  %4486 = vmatprep.mubr.msk.f32.mxu0 %vm144_vm0, %v5176_v13  ;;  %6412 = vst [vmem:[#allocation12_spill] sm:$0xff] %v5246_v34  ;;  %v5392_v13 = vld [vmem:[#allocation2 + $0x150] sm:$0xff]  ;;  %6431 = vst [vmem:[#allocation31_spill] sm:$0xff] %v5394_v11 }
  0x53   : > { %4628 = vmatprep.subr.mxu1 %v5181_v14 }
  0x54   : > { %4434 = vmatmul.mubr.msk.f32.gmra.mxu1 %vm144_vm0, %v5191_v16 }
  0x55   : > { %4487 = vmatmul.mubr.msk.f32.gmra.mxu0 %vm144_vm0, %v5193_v17  ;;  %4436 = vmatprep.mubr.msk.f32.mxu1 %vm144_vm0, %v5197_v18  ;;  %v5378_v17 = vld [vmem:[#allocation2 + $0x152] sm:$0xff] }
  0x56   : > { %4489 = vmatprep.mubr.msk.f32.mxu0 %vm144_vm0, %v5201_v19  ;;  %v5376_v19 = vld [vmem:[#allocation2 + $0x138] sm:$0xff]  ;;  %6429 = vst [vmem:[#allocation29_spill] sm:$0xff] %v5378_v17 }
  0x58   : > { %4437 = vmatmul.mubr.msk.f32.gmra.mxu1 %vm144_vm0, %v5210_v20 }
  0x59   : > { %4490 = vmatmul.mubr.msk.f32.gmra.mxu0 %vm144_vm0, %v5214_v21  ;;  %4439 = vmatprep.mubr.msk.f32.mxu1 %vm144_vm0, %v5216_v22  ;;  %v5362_v21 = vld [vmem:[#allocation2 + $0x13a] sm:$0xff] }
  0x5a   : > { %4492 = vmatprep.mubr.msk.f32.mxu0 %vm144_vm0, %v5218_v23  ;;  %v5360_v23 = vld [vmem:[#allocation2 + $0x120] sm:$0xff]  ;;  %6427 = vst [vmem:[#allocation27_spill] sm:$0xff] %v5362_v21 }
  0x5c   : > { %4440 = vmatmul.mubr.msk.f32.gmra.mxu1 %vm144_vm0, %v5226_v24 }
  0x5d   : > { %4493 = vmatmul.mubr.msk.f32.gmra.mxu0 %vm144_vm0, %v5230_v25  ;;  %4442 = vmatprep.mubr.msk.f32.mxu1 %vm144_vm0, %v5232_v26  ;;  %v5346_v25 = vld [vmem:[#allocation2 + $0x122] sm:$0xff] }
  0x5e   : > { %4495 = vmatprep.mubr.msk.f32.mxu0 %vm144_vm0, %v5234_v27  ;;  %v5344_v27 = vld [vmem:[#allocation2 + $0x108] sm:$0xff]  ;;  %6425 = vst [vmem:[#allocation25_spill] sm:$0xff] %v5346_v25 }
  0x60   : > { %4443 = vmatmul.mubr.msk.f32.gmra.mxu1 %vm144_vm0, %v5242_v28 }
  0x61   : > { %4496 = vmatmul.mubr.msk.f32.gmra.mxu0 %vm144_vm0, %v5246_v34  ;;  %4445 = vmatprep.mubr.msk.f32.mxu1 %vm144_vm0, %v5248_v36  ;;  %v5330_v34 = vld [vmem:[#allocation2 + $0x10a] sm:$0xff] }
  0x62   : > { %4498 = vmatprep.mubr.msk.f32.mxu0 %vm144_vm0, %v5250_v37  ;;  %v5328_v37 = vld [vmem:[#allocation2 + $0xf0] sm:$0xff]  ;;  %6423 = vst [vmem:[#allocation23_spill] sm:$0xff] %v5330_v34 }
  0x64   : > { %4446 = vmatmul.mubr.msk.f32.gmra.mxu1 %vm144_vm0, %v5258_v46 }
  0x65   : > { %4499 = vmatmul.mubr.msk.f32.gmra.mxu0 %vm144_vm0, %v5262_v47  ;;  %4448 = vmatprep.mubr.msk.f32.mxu1 %vm144_vm0, %v5264_v48  ;;  %v5314_v47 = vld [vmem:[#allocation2 + $0xf2] sm:$0xff] }
  0x66   : > { %4501 = vmatprep.mubr.msk.f32.mxu0 %vm144_vm0, %v5266_v49  ;;  %v5312_v49 = vld [vmem:[#allocation2 + $0xd8] sm:$0xff]  ;;  %6421 = vst [vmem:[#allocation21_spill] sm:$0xff] %v5314_v47 }
  0x68   : > { %4449 = vmatmul.mubr.msk.f32.gmra.mxu1 %vm144_vm0, %v5274_v50 }
  0x69   : > { %4502 = vmatmul.mubr.msk.f32.gmra.mxu0 %vm144_vm0, %v5278_v51  ;;  %4451 = vmatprep.mubr.msk.f32.mxu1 %vm144_vm0, %v5280_v3  ;;  %v5306_v51 = vld [vmem:[#allocation2 + $0xc8] sm:$0xff] }
  0x6a   : > { %4504 = vmatprep.mubr.msk.f32.mxu0 %vm144_vm0, %v5282_v5  ;;  %v5310_v5 = vld [vmem:[#allocation2 + $0xe2] sm:$0xff] }
  0x6b   : > { %6420 = vst [vmem:[#allocation20_spill] sm:$0xff] %v5310_v5 }
  0x6c   : > { %4452 = vmatmul.mubr.msk.f32.gmra.mxu1 %vm144_vm0, %v5290_v6 }
  0x6d   : > { %4505 = vmatmul.mubr.msk.f32.gmra.mxu0 %vm144_vm0, %v5294_v9  ;;  %4454 = vmatprep.mubr.msk.f32.mxu1 %vm144_vm0, %v5296_v10  ;;  %v5322_v9 = vld [vmem:[#allocation2 + $0xe0] sm:$0xff] }
  0x6e   : > { %4507 = vmatprep.mubr.msk.f32.mxu0 %vm144_vm0, %v5298_v15  ;;  %v5326_v15 = vld [vmem:[#allocation2 + $0xfa] sm:$0xff] }
  0x6f   : > { %6422 = vst [vmem:[#allocation22_spill] sm:$0xff] %v5326_v15 }
  0x70   : > { %4455 = vmatmul.mubr.msk.f32.gmra.mxu1 %vm144_vm0, %v5306_v51 }
  0x71   : > { %4508 = vmatmul.mubr.msk.f32.gmra.mxu0 %vm144_vm0, %v5310_v5  ;;  %4457 = vmatprep.mubr.msk.f32.mxu1 %vm144_vm0, %v5312_v49  ;;  %v5338_v5 = vld [vmem:[#allocation2 + $0xf8] sm:$0xff] }
  0x72   : > { %4510 = vmatprep.mubr.msk.f32.mxu0 %vm144_vm0, %v5314_v47  ;;  %v5342_v47 = vld [vmem:[#allocation2 + $0x112] sm:$0xff] }
  0x73   : > { %6424 = vst [vmem:[#allocation24_spill] sm:$0xff] %v5342_v47 }
  0x74   : > { %4458 = vmatmul.mubr.msk.f32.gmra.mxu1 %vm144_vm0, %v5322_v9 }
  0x75   : > { %4511 = vmatmul.mubr.msk.f32.gmra.mxu0 %vm144_vm0, %v5326_v15  ;;  %4460 = vmatprep.mubr.msk.f32.mxu1 %vm144_vm0, %v5328_v37  ;;  %v5354_v15 = vld [vmem:[#allocation2 + $0x110] sm:$0xff] }
  0x76   : > { %4513 = vmatprep.mubr.msk.f32.mxu0 %vm144_vm0, %v5330_v34  ;;  %v5358_v34 = vld [vmem:[#allocation2 + $0x12a] sm:$0xff] }
  0x77   : > { %6426 = vst [vmem:[#allocation26_spill] sm:$0xff] %v5358_v34 }
  0x78   : > { %4461 = vmatmul.mubr.msk.f32.gmra.mxu1 %vm144_vm0, %v5338_v5 }
  0x79   : > { %4514 = vmatmul.mubr.msk.f32.gmra.mxu0 %vm144_vm0, %v5342_v47  ;;  %4463 = vmatprep.mubr.msk.f32.mxu1 %vm144_vm0, %v5344_v27  ;;  %v5370_v47 = vld [vmem:[#allocation2 + $0x128] sm:$0xff] }
  0x7a   : > { %4516 = vmatprep.mubr.msk.f32.mxu0 %vm144_vm0, %v5346_v25  ;;  %v5374_v25 = vld [vmem:[#allocation2 + $0x142] sm:$0xff] }
  0x7b   : > { %6428 = vst [vmem:[#allocation28_spill] sm:$0xff] %v5374_v25 }
  0x7c   : > { %4464 = vmatmul.mubr.msk.f32.gmra.mxu1 %vm144_vm0, %v5354_v15 }
  0x7d   : > { %4517 = vmatmul.mubr.msk.f32.gmra.mxu0 %vm144_vm0, %v5358_v34  ;;  %4466 = vmatprep.mubr.msk.f32.mxu1 %vm144_vm0, %v5360_v23  ;;  %v5386_v34 = vld [vmem:[#allocation2 + $0x140] sm:$0xff] }
  0x7e   : > { %4519 = vmatprep.mubr.msk.f32.mxu0 %vm144_vm0, %v5362_v21  ;;  %v5390_v21 = vld [vmem:[#allocation2 + $0x15a] sm:$0xff] }
  0x7f   : > { %6430 = vst [vmem:[#allocation30_spill] sm:$0xff] %v5390_v21 }
  0x80   : > { %4467 = vmatmul.mubr.msk.f32.gmra.mxu1 %vm144_vm0, %v5370_v47 }
  0x81   : > { %4520 = vmatmul.mubr.msk.f32.gmra.mxu0 %vm144_vm0, %v5374_v25  ;;  %4469 = vmatprep.mubr.msk.f32.mxu1 %vm144_vm0, %v5376_v19  ;;  %v5402_v25 = vld [vmem:[#allocation2 + $0x158] sm:$0xff] }
  0x82   : > { %4522 = vmatprep.mubr.msk.f32.mxu0 %vm144_vm0, %v5378_v17  ;;  %v5406_v17 = vld [vmem:[#allocation2 + $0x172] sm:$0xff] }
  0x84   : > { %4470 = vmatmul.mubr.msk.f32.gmra.mxu1 %vm144_vm0, %v5386_v34 }
  0x85   : > { %4523 = vmatmul.mubr.msk.f32.gmra.mxu0 %vm144_vm0, %v5390_v21  ;;  %4472 = vmatprep.mubr.msk.f32.mxu1 %vm144_vm0, %v5392_v13  ;;  %v5416_v21 = vld [vmem:[#allocation2 + $0x170] sm:$0xff] }
  0x86   : > { %4525 = vmatprep.mubr.msk.f32.mxu0 %vm144_vm0, %v5394_v11  ;;  %v5423_v11 = vld [vmem:[%s6344_s1 + $0x40] sm:$0xff] }
  0x88   : > { %4473 = vmatmul.mubr.msk.f32.gmra.mxu1 %vm144_vm0, %v5402_v25 }
  0x89   : > { %4526 = vmatmul.mubr.msk.f32.gmra.mxu0 %vm144_vm0, %v5406_v17  ;;  %4475 = vmatprep.mubr.msk.f32.mxu1 %vm144_vm0, %v5408_v7 }
  0x8a   : > { %4580 = vmatprep.mubr.msk.f32.mxu0 %vm144_vm0, %v5016_v31  ;;  %v5438_v31 = vld [vmem:[%s6344_s1 + $0x38] sm:$0xff] }
  0x8c   : > { %4476 = vmatmul.mubr.msk.f32.gmra.mxu1 %vm144_vm0, %v5416_v21 }
  0x8d   : > { %4581 = vmatmul.mubr.msk.f32.vlgmr.msra.gmra.mxu0 %vm144_vm0, %v5027_v33  ;;  %4530 = vmatprep.mubr.msk.f32.mxu1 %vm144_vm0, %v5171_v12  ;;  %v5566_v33 = vld [vmem:[#allocation2 + $0x188] sm:$0xff] }
  0x8e   : > { %4679 = vmatpush3.msra.mxu0 %v5162_v8  ;;  %4583 = vmatprep.mubr.msk.f32.mxu0 %vm144_vm0, %v5038_v35  ;;  %v6434_v35 = vld [vmem:[#allocation3_spill] sm:$0xff] }
  0x8f   : > { %4778 = vmatprep.subr.mxu0 %v5423_v11 }
  0x90   : > { %4531 = vmatmul.mubr.msk.f32.vlgmr.msra.gmra.mxu1 %vm144_vm0, %v5191_v16 }
  0x91   : > { %4584 = vmatmul.mubr.msk.f32.gmra.mxu0 %vm144_vm0, %v5047_v39  ;;  %4629 = vmatpush3.msra.mxu1 %v5181_v14  ;;  %v6436_v39 = vld [vmem:[#allocation5_spill] sm:$0xff]  ;;  %v6454_v14 = vld [vmem:[#allocation23_spill] sm:$0xff] }
  0x92   : > { %4533 = vmatprep.mubr.msk.f32.mxu1 %vm144_vm0, %v5197_v18  ;;  %4586 = vmatprep.mubr.msk.f32.mxu0 %vm144_vm0, %v5055_v41  ;;  %v6438_v41 = vld [vmem:[#allocation7_spill] sm:$0xff] }
  0x93   : > { %4728 = vmatprep.subr.mxu1 %v5438_v31 }
  0x94   : > { %4534 = vmatmul.mubr.msk.f32.gmra.mxu1 %vm144_vm0, %v5210_v20 }
  0x95   : > { %4587 = vmatmul.mubr.msk.f32.gmra.mxu0 %vm144_vm0, %v5070_v44  ;;  %4536 = vmatprep.mubr.msk.f32.mxu1 %vm144_vm0, %v5216_v22  ;;  %v6441_v44 = vld [vmem:[#allocation10_spill] sm:$0xff] }
  0x96   : > { %4589 = vmatprep.mubr.msk.f32.mxu0 %vm144_vm0, %v5072_v45  ;;  %v6442_v45 = vld [vmem:[#allocation11_spill] sm:$0xff] }
  0x98   : > { %4537 = vmatmul.mubr.msk.f32.gmra.mxu1 %vm144_vm0, %v5226_v24 }
  0x99   : > { %4590 = vmatmul.mubr.msk.f32.gmra.mxu0 %vm144_vm0, %v5096_v53  ;;  %4539 = vmatprep.mubr.msk.f32.mxu1 %vm144_vm0, %v5232_v26  ;;  %v6444_v53 = vld [vmem:[#allocation13_spill] sm:$0xff] }
  0x9a   : > { %4592 = vmatprep.mubr.msk.f32.mxu0 %vm144_vm0, %v5100_v55  ;;  %v6446_v55 = vld [vmem:[#allocation15_spill] sm:$0xff] }
  0x9c   : > { %4540 = vmatmul.mubr.msk.f32.gmra.mxu1 %vm144_vm0, %v5242_v28 }
  0x9d   : > { %4593 = vmatmul.mubr.msk.f32.gmra.mxu0 %vm144_vm0, %v5112_v57  ;;  %4542 = vmatprep.mubr.msk.f32.mxu1 %vm144_vm0, %v5248_v36  ;;  %v6448_v57 = vld [vmem:[#allocation17_spill] sm:$0xff] }
  0x9e   : > { %4595 = vmatprep.mubr.msk.f32.mxu0 %vm144_vm0, %v5116_v59  ;;  %v6449_v59 = vld [vmem:[#allocation18_spill] sm:$0xff] }
  0xa0   : > { %4543 = vmatmul.mubr.msk.f32.gmra.mxu1 %vm144_vm0, %v5258_v46 }
  0xa1   : > { %4596 = vmatmul.mubr.msk.f32.gmra.mxu0 %vm144_vm0, %v5128_v61  ;;  %4545 = vmatprep.mubr.msk.f32.mxu1 %vm144_vm0, %v5264_v48  ;;  %v6450_v61 = vld [vmem:[#allocation19_spill] sm:$0xff] }
  0xa2   : > { %4598 = vmatprep.mubr.msk.f32.mxu0 %vm144_vm0, %v5132_v63  ;;  %v6451_v63 = vld [vmem:[#allocation20_spill] sm:$0xff] }
  0xa4   : > { %4546 = vmatmul.mubr.msk.f32.gmra.mxu1 %vm144_vm0, %v5274_v50 }
  0xa5   : > { %4599 = vmatmul.mubr.msk.f32.gmra.mxu0 %vm144_vm0, %v5144_v1  ;;  %4548 = vmatprep.mubr.msk.f32.mxu1 %vm144_vm0, %v5280_v3  ;;  %v6452_v1 = vld [vmem:[#allocation21_spill] sm:$0xff] }
  0xa6   : > { %4601 = vmatprep.mubr.msk.f32.mxu0 %vm144_vm0, %v5012_v29  ;;  %v5546_v29 = vld [vmem:[#allocation2 + $0x181] sm:$0xff] }
  0xa7   : > { %6432 = vst [vmem:[#allocation32_spill] sm:$0xff] %v5546_v29 }
  0xa8   : > { %4549 = vmatmul.mubr.msk.f32.gmra.mxu1 %vm144_vm0, %v5290_v6 }
  0xa9   : > { %4602 = vmatmul.mubr.msk.f32.gmra.mxu0 %vm144_vm0, %v5014_v30  ;;  %4551 = vmatprep.mubr.msk.f32.mxu1 %vm144_vm0, %v5296_v10  ;;  %v5556_v30 = vld [vmem:[#allocation2 + $0x189] sm:$0xff] }
  0xaa   : > { %4604 = vmatprep.mubr.msk.f32.mxu0 %vm144_vm0, %v5025_v32  ;;  %6433 = vst [vmem:[#allocation33_spill] sm:$0xff] %v5556_v30  ;;  %v5558_v32 = vld [vmem:[#allocation2 + $0x180] sm:$0xff] }
  0xac   : > { %4552 = vmatmul.mubr.msk.f32.gmra.mxu1 %vm144_vm0, %v5306_v51 }
  0xad   : > { %4605 = vmatmul.mubr.msk.f32.gmra.mxu0 %vm144_vm0, %v5045_v38  ;;  %4554 = vmatprep.mubr.msk.f32.mxu1 %vm144_vm0, %v5312_v49  ;;  %v6435_v38 = vld [vmem:[#allocation4_spill] sm:$0xff] }
  0xae   : > { %4607 = vmatprep.mubr.msk.f32.mxu0 %vm144_vm0, %v5053_v40  ;;  %v6437_v40 = vld [vmem:[#allocation6_spill] sm:$0xff] }
  0xb0   : > { %4555 = vmatmul.mubr.msk.f32.gmra.mxu1 %vm144_vm0, %v5322_v9 }
  0xb1   : > { %4608 = vmatmul.mubr.msk.f32.gmra.mxu0 %vm144_vm0, %v5062_v42  ;;  %4557 = vmatprep.mubr.msk.f32.mxu1 %vm144_vm0, %v5328_v37  ;;  %v6439_v42 = vld [vmem:[#allocation8_spill] sm:$0xff] }
  0xb2   : > { %4610 = vmatprep.mubr.msk.f32.mxu0 %vm144_vm0, %v5068_v43  ;;  %v6440_v43 = vld [vmem:[#allocation9_spill] sm:$0xff] }
  0xb4   : > { %4558 = vmatmul.mubr.msk.f32.gmra.mxu1 %vm144_vm0, %v5338_v5 }
  0xb5   : > { %4611 = vmatmul.mubr.msk.f32.gmra.mxu0 %vm144_vm0, %v5092_v52  ;;  %4560 = vmatprep.mubr.msk.f32.mxu1 %vm144_vm0, %v5344_v27  ;;  %v6443_v52 = vld [vmem:[#allocation12_spill] sm:$0xff] }
  0xb6   : > { %4613 = vmatprep.mubr.msk.f32.mxu0 %vm144_vm0, %v5098_v54  ;;  %v6445_v54 = vld [vmem:[#allocation14_spill] sm:$0xff] }
  0xb8   : > { %4561 = vmatmul.mubr.msk.f32.gmra.mxu1 %vm144_vm0, %v5354_v15 }
  0xb9   : > { %4614 = vmatmul.mubr.msk.f32.gmra.mxu0 %vm144_vm0, %v5108_v56  ;;  %4563 = vmatprep.mubr.msk.f32.mxu1 %vm144_vm0, %v5360_v23  ;;  %v6447_v56 = vld [vmem:[#allocation16_spill] sm:$0xff] }
  0xba   : > { %4616 = vmatprep.mubr.msk.f32.mxu0 %vm144_vm0, %v5114_v58 }
  0xbc   : > { %4564 = vmatmul.mubr.msk.f32.gmra.mxu1 %vm144_vm0, %v5370_v47 }
  0xbd   : > { %4617 = vmatmul.mubr.msk.f32.gmra.mxu0 %vm144_vm0, %v5124_v60  ;;  %4566 = vmatprep.mubr.msk.f32.mxu1 %vm144_vm0, %v5376_v19 }
  0xbe   : > { %4619 = vmatprep.mubr.msk.f32.mxu0 %vm144_vm0, %v5130_v62 }
  0xc0   : > { %4567 = vmatmul.mubr.msk.f32.gmra.mxu1 %vm144_vm0, %v5386_v34 }
  0xc1   : > { %4620 = vmatmul.mubr.msk.f32.gmra.mxu0 %vm144_vm0, %v5140_v0  ;;  %4569 = vmatprep.mubr.msk.f32.mxu1 %vm144_vm0, %v5392_v13 }
  0xc2   : > { %4622 = vmatprep.mubr.msk.f32.mxu0 %vm144_vm0, %v5146_v2 }
  0xc4   : > { %4570 = vmatmul.mubr.msk.f32.gmra.mxu1 %vm144_vm0, %v5402_v25 }
  0xc5   : > { %4623 = vmatmul.mubr.msk.f32.gmra.mxu0 %vm144_vm0, %v5154_v4  ;;  %4572 = vmatprep.mubr.msk.f32.mxu1 %vm144_vm0, %v5408_v7 }
  0xc6   : > { %4625 = vmatprep.mubr.msk.f32.mxu0 %vm144_vm0, %v5546_v29 }
  0xc8   : > { %4573 = vmatmul.mubr.msk.f32.gmra.mxu1 %vm144_vm0, %v5416_v21 }
  0xc9   : > { %4626 = vmatmul.mubr.msk.f32.gmra.mxu0 %vm144_vm0, %v5556_v30  ;;  %4575 = vmatprep.mubr.msk.f32.mxu1 %vm144_vm0, %v5558_v32 }
  0xca   : > { %4680 = vmatprep.mubr.msk.f32.mxu0 %vm144_vm0, %v5197_v18 }
  0xcc   : > { %4576 = vmatmul.mubr.msk.f32.gmra.mxu1 %vm144_vm0, %v5566_v33 }
  0xcd   : > { %4681 = vmatmul.mubr.msk.f32.vlgmr.msra.gmra.mxu0 %vm144_vm0, %v5210_v20  ;;  %4630 = vmatprep.mubr.msk.f32.mxu1 %vm144_vm0, %v6434_v35 }
  0xce   : > { %4779 = vmatpush3.msra.mxu0 %v5423_v11  ;;  %4683 = vmatprep.mubr.msk.f32.mxu0 %vm144_vm0, %v5216_v22  ;;  %v6453_v11 = vld [vmem:[#allocation22_spill] sm:$0xff]  ;;  %v6455_v22 = vld [vmem:[#allocation24_spill] sm:$0xff] }
  0xd0   : > { %4631 = vmatmul.mubr.msk.f32.vlgmr.msra.gmra.mxu1 %vm144_vm0, %v6435_v38 }
  0xd1   : > { %4684 = vmatmul.mubr.msk.f32.gmra.mxu0 %vm144_vm0, %v5226_v24  ;;  %4729 = vmatpush3.msra.mxu1 %v5438_v31  ;;  %v6456_v24 = vld [vmem:[#allocation25_spill] sm:$0xff] }
  0xd2   : > { %4633 = vmatprep.mubr.msk.f32.mxu1 %vm144_vm0, %v6436_v39  ;;  %4686 = vmatprep.mubr.msk.f32.mxu0 %vm144_vm0, %v5232_v26 }
  0xd4   : > { %4634 = vmatmul.mubr.msk.f32.gmra.mxu1 %vm144_vm0, %v6437_v40 }
  0xd5   : > { %4687 = vmatmul.mubr.msk.f32.gmra.mxu0 %vm144_vm0, %v5242_v28  ;;  %4636 = vmatprep.mubr.msk.f32.mxu1 %vm144_vm0, %v6438_v41  ;;  %v6457_v28 = vld [vmem:[#allocation26_spill] sm:$0xff] }
  0xd6   : > { %4689 = vmatprep.mubr.msk.f32.mxu0 %vm144_vm0, %v5248_v36 }
  0xd8   : > { %4637 = vmatmul.mubr.msk.f32.gmra.mxu1 %vm144_vm0, %v6439_v42 }
  0xd9   : > { %4690 = vmatmul.mubr.msk.f32.gmra.mxu0 %vm144_vm0, %v5258_v46  ;;  %4639 = vmatprep.mubr.msk.f32.mxu1 %vm144_vm0, %v6440_v43 }
  0xda   : > { %4692 = vmatprep.mubr.msk.f32.mxu0 %vm144_vm0, %v5264_v48 }
  0xdc   : > { %4640 = vmatmul.mubr.msk.f32.gmra.mxu1 %vm144_vm0, %v6441_v44 }
  0xdd   : > { %4693 = vmatmul.mubr.msk.f32.gmra.mxu0 %vm144_vm0, %v5274_v50  ;;  %4642 = vmatprep.mubr.msk.f32.mxu1 %vm144_vm0, %v6442_v45  ;;  %v2553_v50 = vld [vmem:[#allocation2 + $0x198] sm:$0xff] }
  0xde   : > { %4695 = vmatprep.mubr.msk.f32.mxu0 %vm144_vm0, %v5280_v3  ;;  %v6462_v3 = vld [vmem:[#allocation30_spill] sm:$0xff] }
  0xe0   : > { %4643 = vmatmul.mubr.msk.f32.gmra.mxu1 %vm144_vm0, %v6443_v52 }
  0xe1   : > { %4696 = vmatmul.mubr.msk.f32.gmra.mxu0 %vm144_vm0, %v5290_v6  ;;  %4645 = vmatprep.mubr.msk.f32.mxu1 %vm144_vm0, %v6444_v53  ;;  %v2554_v6 = vld [vmem:[#allocation2 + $0x1a0] sm:$0xff] }
  0xe2   : > { %4698 = vmatprep.mubr.msk.f32.mxu0 %vm144_vm0, %v5296_v10 }
  0xe4   : > { %4646 = vmatmul.mubr.msk.f32.gmra.mxu1 %vm144_vm0, %v6445_v54 }
  0xe5   : > { %4699 = vmatmul.mubr.msk.f32.gmra.mxu0 %vm144_vm0, %v5306_v51  ;;  %4648 = vmatprep.mubr.msk.f32.mxu1 %vm144_vm0, %v6446_v55 }
  0xe6   : > { %4701 = vmatprep.mubr.msk.f32.mxu0 %vm144_vm0, %v5312_v49  ;;  %v5636_v58 = vpop.f32.mrf.mxu0 }
  0xe8   : > { %4649 = vmatmul.mubr.msk.f32.gmra.mxu1 %vm144_vm0, %v6447_v56  ;;  %v5642_v60 = vpop.f32.mrf.mxu0 }
  0xe9   : > { %4702 = vmatmul.mubr.msk.f32.gmra.mxu0 %vm144_vm0, %v5322_v9  ;;  %4651 = vmatprep.mubr.msk.f32.mxu1 %vm144_vm0, %v6448_v57 }
  0xea   : > { %4704 = vmatprep.mubr.msk.f32.mxu0 %vm144_vm0, %v5328_v37 }
  0xec   : > { %4652 = vmatmul.mubr.msk.f32.gmra.mxu1 %vm144_vm0, %v6449_v59 }
  0xed   : > { %4705 = vmatmul.mubr.msk.f32.gmra.mxu0 %vm144_vm0, %v5338_v5  ;;  %4654 = vmatprep.mubr.msk.f32.mxu1 %vm144_vm0, %v6450_v61 }
  0xee   : > { %4707 = vmatprep.mubr.msk.f32.mxu0 %vm144_vm0, %v5344_v27 }
  0xf0   : > { %v5648_v62 = vpop.f32.mrf.mxu1  ;;  %4655 = vmatmul.mubr.msk.f32.gmra.mxu1 %vm144_vm0, %v6451_v63 }
  0xf1   : > { %v5652_v0 = vpop.f32.mrf.mxu0  ;;  %4708 = vmatmul.mubr.msk.f32.gmra.mxu0 %vm144_vm0, %v5354_v15  ;;  %4657 = vmatprep.mubr.msk.f32.mxu1 %vm144_vm0, %v6452_v1  ;;  %v5743_v15 = vld [vmem:[#allocation2 + $0x182] sm:$0xff] }
  0xf2   : > { %4710 = vmatprep.mubr.msk.f32.mxu0 %vm144_vm0, %v5360_v23  ;;  %v5660_v2 = vpop.f32.mrf.mxu1 }
  0xf3   : > { %v5662_v4 = vpop.f32.mrf.mxu0 }
  0xf4   : > { %v5664_v8 = vpop.f32.mrf.mxu1  ;;  %4658 = vmatmul.mubr.msk.f32.gmra.mxu1 %vm144_vm0, %v6453_v11 }
  0xf5   : > { %v5668_v12 = vpop.f32.mrf.mxu0  ;;  %4711 = vmatmul.mubr.msk.f32.gmra.mxu0 %vm144_vm0, %v5370_v47  ;;  %4660 = vmatprep.mubr.msk.f32.mxu1 %vm144_vm0, %v6454_v14  ;;  %v6459_v47 = vld [vmem:[#allocation28_spill] sm:$0xff] }
  0xf6   : > { %4713 = vmatprep.mubr.msk.f32.mxu0 %vm144_vm0, %v5376_v19  ;;  %v5676_v16 = vpop.f32.mrf.mxu1 }
  0xf7   : > { %v5678_v18 = vpop.f32.mrf.mxu0 }
  0xf8   : > { %v5680_v20 = vpop.f32.mrf.mxu1  ;;  %4661 = vmatmul.mubr.msk.f32.gmra.mxu1 %vm144_vm0, %v6455_v22 }
  0xf9   : > { %v5684_v23 = vpop.f32.mrf.mxu0  ;;  %4714 = vmatmul.mubr.msk.f32.gmra.mxu0 %vm144_vm0, %v5386_v34  ;;  %4663 = vmatprep.mubr.msk.f32.mxu1 %vm144_vm0, %v6456_v24  ;;  %v6458_v34 = vld [vmem:[#allocation27_spill] sm:$0xff] }
  0xfa   : > { %4716 = vmatprep.mubr.msk.f32.mxu0 %vm144_vm0, %v5392_v13  ;;  %v5692_v19 = vpop.f32.mrf.mxu1 }
  0xfb   : > { %v5694_v26 = vpop.f32.mrf.mxu0 }
  0xfc   : > { %v5696_v27 = vpop.f32.mrf.mxu1  ;;  %4664 = vmatmul.mubr.msk.f32.gmra.mxu1 %vm144_vm0, %v6457_v28 }
  0xfd   : > { %v5700_v36 = vpop.f32.mrf.mxu0  ;;  %4717 = vmatmul.mubr.msk.f32.gmra.mxu0 %vm144_vm0, %v5402_v25  ;;  %4666 = vmatprep.mubr.msk.f32.mxu1 %vm144_vm0, %v6458_v34  ;;  %v6460_v25 = vld [vmem:[#allocation29_spill] sm:$0xff] }
  0xfe   : > { %4719 = vmatprep.mubr.msk.f32.mxu0 %vm144_vm0, %v5408_v7  ;;  %v5708_v13 = vpop.f32.mrf.mxu1 }
  0xff   : > { %v5710_v37 = vpop.f32.mrf.mxu0 }
 0x100   : > { %v5712_v46 = vpop.f32.mrf.mxu1  ;;  %4667 = vmatmul.mubr.msk.f32.gmra.mxu1 %vm144_vm0, %v6459_v47 }
 0x101   : > { %v5716_v48 = vpop.f32.mrf.mxu0  ;;  %4720 = vmatmul.mubr.msk.f32.gmra.mxu0 %vm144_vm0, %v5416_v21  ;;  %4669 = vmatprep.mubr.msk.f32.mxu1 %vm144_vm0, %v6460_v25  ;;  %v6463_v21 = vld [vmem:[#allocation31_spill] sm:$0xff] }
 0x102   : > { %4722 = vmatprep.mubr.msk.f32.mxu0 %vm144_vm0, %v5558_v32  ;;  %v5724_v7 = vpop.f32.mrf.mxu1 }
 0x103   : > { %v5726_v49 = vpop.f32.mrf.mxu0 }
 0x104   : > { %v5728_v51 = vpop.f32.mrf.mxu1  ;;  %4670 = vmatmul.mubr.msk.f32.gmra.mxu1 %vm144_vm0, %v6462_v3 }
 0x105   : > { %6461 = vst [vmem:[#allocation3_spill] sm:$0xff] %v5728_v51  ;;  %v5732_v5 = vpop.f32.mrf.mxu0  ;;  %4723 = vmatmul.mubr.msk.f32.gmra.mxu0 %vm144_vm0, %v5566_v33  ;;  %4672 = vmatprep.mubr.msk.f32.mxu1 %vm144_vm0, %v6463_v21  ;;  %v5754_v33 = vld [vmem:[#allocation2 + $0x18a] sm:$0xff]  ;;  %v2911_v21 = vld [vmem:[#allocation2 + $0x39] sm:$0xff] }
 0x106   : > { %4725 = vmatprep.mubr.msk.f32.mxu0 %vm144_vm0, %v2553_v50  ;;  %v5739_v9 = vpop.f32.mrf.mxu1  ;;  %v2910_v50 = vld [vmem:[#allocation2 + $0x31] sm:$0xff] }
 0x107   : > { %6464 = vst [vmem:[#allocation4_spill] sm:$0xff] %v5739_v9  ;;  %v5741_v10 = vpop.f32.mrf.mxu0 }
 0x108   : > { %v5745_v31 = vpop.f32.mrf.mxu1  ;;  %4673 = vmatmul.mubr.msk.f32.gmra.mxu1 %vm144_vm0, %v5406_v17 }
 0x109   : > { %6465 = vst [vmem:[#allocation5_spill] sm:$0xff] %v5745_v31  ;;  %v5749_v32 = vpop.f32.mrf.mxu0  ;;  %4726 = vmatmul.mubr.msk.f32.gmra.mxu0 %vm144_vm0, %v2554_v6  ;;  %4675 = vmatprep.mubr.msk.f32.mxu1 %vm144_vm0, %v5743_v15 }
 0x10a   : > { %4780 = vmatprep.mubr.msk.f32.mxu0 %vm144_vm0, %v6436_v39  ;;  %v5758_v35 = vpop.f32.mrf.mxu1 }
 0x10b   : > { %6466 = vst [vmem:[#allocation6_spill] sm:$0xff] %v5758_v35  ;;  %v5760_v38 = vpop.f32.mrf.mxu0  ;;  %v2912_v35 = vld [vmem:[#allocation2 + $0x49] sm:$0xff] }
 0x10c   : > { %v5762_v3 = vpop.f32.mrf.mxu1  ;;  %4676 = vmatmul.mubr.msk.f32.gmra.mxu1 %vm144_vm0, %v5754_v33 }
 0x10d   : > { %6467 = vst [vmem:[#allocation7_spill] sm:$0xff] %v5762_v3  ;;  %v4482_v17 = vpop.f32.mrf.mxu0  ;;  %4781 = vmatmul.mubr.msk.f32.vlgmr.msra.gmra.mxu0 %vm144_vm0, %v6437_v40  ;;  %4730 = vmatprep.mubr.msk.f32.mxu1 %vm144_vm0, %v2910_v50  ;;  %v2913_v40 = vld [vmem:[#allocation2 + $0x51] sm:$0xff] }
 0x10e   : > { %4783 = vmatprep.mubr.msk.f32.mxu0 %vm144_vm0, %v6438_v41  ;;  %v5771_v39 = vpop.f32.mrf.mxu1 }
 0x10f   : > { %6468 = vst [vmem:[#allocation8_spill] sm:$0xff] %v5771_v39  ;;  %v1170_v6 = vpop.f32.mrf.mxu0  ;;  %v2914_v39 = vld [vmem:[#allocation2 + $0x61] sm:$0xff] }
 0x110   : > { %v4432_v31 = vpop.f32.mrf.mxu1  ;;  %4731 = vmatmul.mubr.msk.f32.vlgmr.msra.gmra.mxu1 %vm144_vm0, %v2911_v21 }
 0x111   : > { %v4485_v3 = vpop.f32.mrf.mxu0  ;;  %4784 = vmatmul.mubr.msk.f32.gmra.mxu0 %vm144_vm0, %v6439_v42  ;;  %v821_v30 = vadd.f32 %v4432_v31, %v5636_v58  ;;  %4733 = vmatprep.mubr.msk.f32.mxu1 %vm144_vm0, %v2912_v35 }
 0x112   : > { %4786 = vmatprep.mubr.msk.f32.mxu0 %vm144_vm0, %v6440_v43  ;;  %v815_v41 = vpop.f32.mrf.mxu1  ;;  %v2915_v43 = vld [vmem:[#allocation2 + $0x69] sm:$0xff] }
 0x113   : > { %v1180_v50 = vpop.f32.mrf.mxu0  ;;  %v5780_v9 = vadd.f32 %v4482_v17, %v821_v30  ;;  %v816_v29 = vadd.f32 %v815_v41, %v5642_v60  ;;  %v2916_v60 = vld [vmem:[#allocation2 + $0x79] sm:$0xff] }
 0x114   : > { %v4435_v21 = vpop.f32.mrf.mxu1  ;;  %4734 = vmatmul.mubr.msk.f32.gmra.mxu1 %vm144_vm0, %v2913_v40 }
 0x115   : > { %v4488_v51 = vpop.f32.mrf.mxu0  ;;  %4787 = vmatmul.mubr.msk.f32.gmra.mxu0 %vm144_vm0, %v6441_v44  ;;  %v5786_v42 = vadd.f32 %v1170_v6, %v816_v29  ;;  %v831_v58 = vadd.f32 %v4435_v21, %v5652_v0  ;;  %4736 = vmatprep.mubr.msk.f32.mxu1 %vm144_vm0, %v2914_v39 }
 0x116   : > { %4789 = vmatprep.mubr.msk.f32.mxu0 %vm144_vm0, %v6442_v45  ;;  %v825_v30 = vpop.f32.mrf.mxu1  ;;  %v2917_v45 = vld [vmem:[#allocation2 + $0x81] sm:$0xff] }
 0x117   : > { %v1190_v31 = vpop.f32.mrf.mxu0  ;;  %v5792_v35 = vadd.f32 %v4485_v3, %v831_v58  ;;  %v826_v17 = vadd.f32 %v825_v30, %v5662_v4  ;;  %v2918_v4 = vld [vmem:[#allocation2 + $0x91] sm:$0xff] }
 0x118   : > { %v4438_v40 = vpop.f32.mrf.mxu1  ;;  %4737 = vmatmul.mubr.msk.f32.gmra.mxu1 %vm144_vm0, %v2915_v43 }
 0x119   : > { %v4491_v29 = vpop.f32.mrf.mxu0  ;;  %4790 = vmatmul.mubr.msk.f32.gmra.mxu0 %vm144_vm0, %v6443_v52  ;;  %v5798_v44 = vadd.f32 %v1180_v50, %v826_v17  ;;  %v841_v0 = vadd.f32 %v4438_v40, %v5668_v12  ;;  %4739 = vmatprep.mubr.msk.f32.mxu1 %vm144_vm0, %v2916_v60 }
 0x11a   : > { %4792 = vmatprep.mubr.msk.f32.mxu0 %vm144_vm0, %v6444_v53  ;;  %v835_v3 = vpop.f32.mrf.mxu1  ;;  %v2919_v53 = vld [vmem:[#allocation2 + $0x99] sm:$0xff] }
 0x11b   : > { %v1200_v39 = vpop.f32.mrf.mxu0  ;;  %v5804_v6 = vadd.f32 %v4488_v51, %v841_v0  ;;  %v836_v41 = vadd.f32 %v835_v3, %v5678_v18  ;;  %v2920_v18 = vld [vmem:[#allocation2 + $0xa9] sm:$0xff] }
 0x11c   : > { %v4441_v21 = vpop.f32.mrf.mxu1  ;;  %4740 = vmatmul.mubr.msk.f32.gmra.mxu1 %vm144_vm0, %v2917_v45 }
 0x11d   : > { %v4494_v52 = vpop.f32.mrf.mxu0  ;;  %4793 = vmatmul.mubr.msk.f32.gmra.mxu0 %vm144_vm0, %v6445_v54  ;;  %v5810_v12 = vadd.f32 %v1190_v31, %v836_v41  ;;  %v851_v50 = vadd.f32 %v4441_v21, %v5684_v23  ;;  %4742 = vmatprep.mubr.msk.f32.mxu1 %vm144_vm0, %v2918_v4 }
 0x11e   : > { %4795 = vmatprep.mubr.msk.f32.mxu0 %vm144_vm0, %v6446_v55  ;;  %v845_v51 = vpop.f32.mrf.mxu1  ;;  %v2921_v55 = vld [vmem:[#allocation2 + $0xb1] sm:$0xff] }
 0x11f   : > { %v1210_v58 = vpop.f32.mrf.mxu0  ;;  %v5816_v43 = vadd.f32 %v4491_v29, %v851_v50  ;;  %v846_v30 = vadd.f32 %v845_v51, %v5694_v26  ;;  %v2922_v26 = vld [vmem:[#allocation2 + $0xc1] sm:$0xff] }
 0x120   : > { %v4444_v60 = vpop.f32.mrf.mxu1  ;;  %4743 = vmatmul.mubr.msk.f32.gmra.mxu1 %vm144_vm0, %v2919_v53 }
 0x121   : > { %v4497_v54 = vpop.f32.mrf.mxu0  ;;  %4796 = vmatmul.mubr.msk.f32.gmra.mxu0 %vm144_vm0, %v6447_v56  ;;  %v5822_v23 = vadd.f32 %v1200_v39, %v846_v30  ;;  %v861_v31 = vadd.f32 %v4444_v60, %v5700_v36  ;;  %4745 = vmatprep.mubr.msk.f32.mxu1 %vm144_vm0, %v2920_v18 }
 0x122   : > { %4798 = vmatprep.mubr.msk.f32.mxu0 %vm144_vm0, %v6448_v57  ;;  %v855_v17 = vpop.f32.mrf.mxu1  ;;  %v2923_v57 = vld [vmem:[#allocation2 + $0xc9] sm:$0xff] }
 0x123   : > { %v1220_v40 = vpop.f32.mrf.mxu0  ;;  %v5828_v29 = vadd.f32 %v4494_v52, %v861_v31  ;;  %v856_v0 = vadd.f32 %v855_v17, %v5710_v37  ;;  %v2924_v37 = vld [vmem:[#allocation2 + $0xd9] sm:$0xff] }
 0x124   : > { %v4447_v45 = vpop.f32.mrf.mxu1  ;;  %4746 = vmatmul.mubr.msk.f32.gmra.mxu1 %vm144_vm0, %v2921_v55 }
 0x125   : > { %v4500_v56 = vpop.f32.mrf.mxu0  ;;  %4799 = vmatmul.mubr.msk.f32.gmra.mxu0 %vm144_vm0, %v6449_v59  ;;  %v5834_v36 = vadd.f32 %v1210_v58, %v856_v0  ;;  %v871_v3 = vadd.f32 %v4447_v45, %v5716_v48  ;;  %4748 = vmatprep.mubr.msk.f32.mxu1 %vm144_vm0, %v2922_v26 }
 0x126   : > { %4801 = vmatprep.mubr.msk.f32.mxu0 %vm144_vm0, %v6450_v61  ;;  %v865_v39 = vpop.f32.mrf.mxu1  ;;  %v2925_v61 = vld [vmem:[#allocation2 + $0xe1] sm:$0xff] }
 0x127   : > { %v1230_v4 = vpop.f32.mrf.mxu0  ;;  %v5840_v41 = vadd.f32 %v4497_v54, %v871_v3  ;;  %v866_v21 = vadd.f32 %v865_v39, %v5726_v49  ;;  %v2926_v49 = vld [vmem:[#allocation2 + $0xf1] sm:$0xff] }
 0x128   : > { %v4450_v52 = vpop.f32.mrf.mxu1  ;;  %4749 = vmatmul.mubr.msk.f32.gmra.mxu1 %vm144_vm0, %v2923_v57 }
 0x129   : > { %v4503_v59 = vpop.f32.mrf.mxu0  ;;  %4802 = vmatmul.mubr.msk.f32.gmra.mxu0 %vm144_vm0, %v6451_v63  ;;  %v5846_v48 = vadd.f32 %v1220_v40, %v866_v21  ;;  %v881_v50 = vadd.f32 %v4450_v52, %v5732_v5  ;;  %4751 = vmatprep.mubr.msk.f32.mxu1 %vm144_vm0, %v2924_v37 }
 0x12a   : > { %4804 = vmatprep.mubr.msk.f32.mxu0 %vm144_vm0, %v6452_v1  ;;  %v875_v53 = vpop.f32.mrf.mxu1  ;;  %v2927_v1 = vld [vmem:[#allocation2 + $0xf9] sm:$0xff] }
 0x12b   : > { %v1240_v51 = vpop.f32.mrf.mxu0  ;;  %v5852_v58 = vadd.f32 %v4500_v56, %v881_v50  ;;  %v876_v18 = vadd.f32 %v875_v53, %v5741_v10  ;;  %v2928_v10 = vld [vmem:[#allocation2 + $0x109] sm:$0xff] }
 0x12c   : > { %v4453_v30 = vpop.f32.mrf.mxu1  ;;  %4752 = vmatmul.mubr.msk.f32.gmra.mxu1 %vm144_vm0, %v2925_v61  ;;  %v3322_v61 = vld [vmem:[#allocation2 + $0x15a] sm:$0xff] }
 0x12d   : > { %v4506_v63 = vpop.f32.mrf.mxu0  ;;  %4805 = vmatmul.mubr.msk.f32.gmra.mxu0 %vm144_vm0, %v6453_v11  ;;  %v5858_v5 = vadd.f32 %v1230_v4, %v876_v18  ;;  %v891_v60 = vadd.f32 %v4453_v30, %v5749_v32  ;;  %4754 = vmatprep.mubr.msk.f32.mxu1 %vm144_vm0, %v2926_v49  ;;  %v3323_v49 = vld [vmem:[#allocation2 + $0x16a] sm:$0xff] }
 0x12e   : > { %4807 = vmatprep.mubr.msk.f32.mxu0 %vm144_vm0, %v6454_v14  ;;  %v885_v54 = vpop.f32.mrf.mxu1  ;;  %v2929_v14 = vld [vmem:[#allocation2 + $0x111] sm:$0xff] }
 0x12f   : > { %v1250_v31 = vpop.f32.mrf.mxu0  ;;  %v5864_v55 = vadd.f32 %v4503_v59, %v891_v60  ;;  %v886_v17 = vadd.f32 %v885_v54, %v5760_v38  ;;  %v2930_v38 = vld [vmem:[#allocation2 + $0x121] sm:$0xff] }
 0x130   : > { %v4456_v40 = vpop.f32.mrf.mxu1  ;;  %4755 = vmatmul.mubr.msk.f32.gmra.mxu1 %vm144_vm0, %v2927_v1  ;;  %v3324_v1 = vld [vmem:[#allocation2 + $0x172] sm:$0xff] }
 0x131   : > { %v4509_v11 = vpop.f32.mrf.mxu0  ;;  %4808 = vmatmul.mubr.msk.f32.gmra.mxu0 %vm144_vm0, %v6455_v22  ;;  %v5870_v32 = vadd.f32 %v1240_v51, %v886_v17  ;;  %v901_v26 = vadd.f32 %v4456_v40, %v5648_v62  ;;  %4757 = vmatprep.mubr.msk.f32.mxu1 %vm144_vm0, %v2928_v10  ;;  %v2934_v51 = vld [vmem:[#allocation2 + $0x151] sm:$0xff]  ;;  %v2936_v10 = vld [vmem:[#allocation2 + $0x169] sm:$0xff] }
 0x132   : > { %4810 = vmatprep.mubr.msk.f32.mxu0 %vm144_vm0, %v6456_v24  ;;  %v895_v0 = vpop.f32.mrf.mxu1  ;;  %v2931_v24 = vld [vmem:[#allocation2 + $0x129] sm:$0xff] }
 0x133   : > { %v1260_v45 = vpop.f32.mrf.mxu0  ;;  %v5876_v56 = vadd.f32 %v4506_v63, %v901_v26  ;;  %v896_v3 = vadd.f32 %v895_v0, %v5660_v2  ;;  %v2932_v2 = vld [vmem:[#allocation2 + $0x139] sm:$0xff] }
 0x134   : > { %v4459_v57 = vpop.f32.mrf.mxu1  ;;  %4758 = vmatmul.mubr.msk.f32.gmra.mxu1 %vm144_vm0, %v2929_v14  ;;  %v2937_v14 = vld [vmem:[#allocation2 + $0x171] sm:$0xff] }
 0x135   : > { %v4512_v22 = vpop.f32.mrf.mxu0  ;;  %4811 = vmatmul.mubr.msk.f32.gmra.mxu0 %vm144_vm0, %v6457_v28  ;;  %v5882_v62 = vadd.f32 %v1250_v31, %v896_v3  ;;  %v911_v39 = vadd.f32 %v4459_v57, %v5664_v8  ;;  %4760 = vmatprep.mubr.msk.f32.mxu1 %vm144_vm0, %v2930_v38  ;;  %v3327_v38 = vld [vmem:[#allocation2 + $0x19a] sm:$0xff] }
 0x136   : > { %4813 = vmatprep.mubr.msk.f32.mxu0 %vm144_vm0, %v6458_v34  ;;  %v905_v4 = vpop.f32.mrf.mxu1  ;;  %v2933_v34 = vld [vmem:[#allocation2 + $0x141] sm:$0xff] }
 0x137   : > { %v1270_v37 = vpop.f32.mrf.mxu0  ;;  %v5888_v21 = vadd.f32 %v4509_v11, %v911_v39  ;;  %v906_v52 = vadd.f32 %v905_v4, %v5676_v16  ;;  %v6469_v39 = vld [vmem:[#allocation3_spill] sm:$0xff]  ;;  %v6470_v4 = vld [vmem:[#allocation32_spill] sm:$0xff] }
 0x138   : > { %v4462_v59 = vpop.f32.mrf.mxu1  ;;  %4761 = vmatmul.mubr.msk.f32.gmra.mxu1 %vm144_vm0, %v2931_v24 }
 0x139   : > { %v4515_v28 = vpop.f32.mrf.mxu0  ;;  %4814 = vmatmul.mubr.msk.f32.gmra.mxu0 %vm144_vm0, %v6459_v47  ;;  %v5894_v8 = vadd.f32 %v1260_v45, %v906_v52  ;;  %v921_v50 = vadd.f32 %v4462_v59, %v5680_v20  ;;  %4763 = vmatprep.mubr.msk.f32.mxu1 %vm144_vm0, %v2932_v2  ;;  %v6471_v59 = vld [vmem:[#allocation4_spill] sm:$0xff] }
 0x13a   : > { %4816 = vmatprep.mubr.msk.f32.mxu0 %vm144_vm0, %v6460_v25  ;;  %v915_v53 = vpop.f32.mrf.mxu1  ;;  %v2935_v25 = vld [vmem:[#allocation2 + $0x159] sm:$0xff] }
 0x13b   : > { %v1280_v16 = vpop.f32.mrf.mxu0  ;;  %v5900_v18 = vadd.f32 %v4512_v22, %v921_v50  ;;  %v916_v30 = vadd.f32 %v915_v53, %v5692_v19  ;;  %v6473_v53 = vld [vmem:[#allocation5_spill] sm:$0xff] }
 0x13c   : > { %v4465_v47 = vpop.f32.mrf.mxu1  ;;  %4764 = vmatmul.mubr.msk.f32.gmra.mxu1 %vm144_vm0, %v2933_v34  ;;  %v6472_v34 = vld [vmem:[#allocation33_spill] sm:$0xff] }
 0x13d   : > { %v4518_v63 = vpop.f32.mrf.mxu0  ;;  %4817 = vmatmul.mubr.msk.f32.gmra.mxu0 %vm144_vm0, %v3322_v61  ;;  %v5905_v20 = vadd.f32 %v1270_v37, %v916_v30  ;;  %v931_v60 = vadd.f32 %v4465_v47, %v5696_v27  ;;  %4766 = vmatprep.mubr.msk.f32.mxu1 %vm144_vm0, %v2934_v51  ;;  %v2941_v51 = vld [vmem:[#allocation2 + $0x1a1] sm:$0xff] }
 0x13e   : > { %4819 = vmatprep.mubr.msk.f32.mxu0 %vm144_vm0, %v3323_v49  ;;  %v925_v54 = vpop.f32.mrf.mxu1 }
 0x13f   : > { %v1290_v31 = vpop.f32.mrf.mxu0  ;;  %v5910_v19 = vadd.f32 %v4515_v28, %v931_v60  ;;  %v926_v17 = vadd.f32 %v925_v54, %v5708_v13 }
 0x140   : > { %v4468_v40 = vpop.f32.mrf.mxu1  ;;  %4767 = vmatmul.mubr.msk.f32.gmra.mxu1 %vm144_vm0, %v2935_v25 }
 0x141   : > { %v4521_v11 = vpop.f32.mrf.mxu0  ;;  %4820 = vmatmul.mubr.msk.f32.gmra.mxu0 %vm144_vm0, %v3324_v1  ;;  %v5915_v27 = vadd.f32 %v1280_v16, %v926_v17  ;;  %v941_v26 = vadd.f32 %v4468_v40, %v5712_v46  ;;  %4769 = vmatprep.mubr.msk.f32.mxu1 %vm144_vm0, %v2936_v10 }
 0x142   : > { %4822 = vmatprep.mubr.msk.f32.mxu0 %vm144_vm0, %v5743_v15  ;;  %v935_v0 = vpop.f32.mrf.mxu1  ;;  %v3328_v15 = vld [vmem:[#allocation2 + $0x1a2] sm:$0xff] }
 0x143   : > { %v1300_v45 = vpop.f32.mrf.mxu0  ;;  %v5921_v13 = vadd.f32 %v4518_v63, %v941_v26  ;;  %v936_v3 = vadd.f32 %v935_v0, %v5724_v7  ;;  %v2940_v7 = vld [vmem:[#allocation2 + $0x199] sm:$0xff]  ;;  %v6474_v63 = vld [vmem:[#allocation6_spill] sm:$0xff] }
 0x144   : > { %v4471_v57 = vpop.f32.mrf.mxu1  ;;  %4770 = vmatmul.mubr.msk.f32.gmra.mxu1 %vm144_vm0, %v2937_v14  ;;  %v6476_v26 = vld [vmem:[#allocation8_spill] sm:$0xff] }
 0x145   : > { %v4524_v22 = vpop.f32.mrf.mxu0  ;;  %4823 = vmatmul.mubr.msk.f32.gmra.mxu0 %vm144_vm0, %v5754_v33  ;;  %v5927_v46 = vadd.f32 %v1290_v31, %v936_v3  ;;  %v951_v24 = vadd.f32 %v4471_v57, %v6469_v39  ;;  %4772 = vmatprep.mubr.msk.f32.mxu1 %vm144_vm0, %v6470_v4  ;;  %v6475_v31 = vld [vmem:[#allocation7_spill] sm:$0xff] }
 0x146   : > { %4825 = vmatprep.mubr.msk.f32.mxu0 %vm144_vm0, %v3327_v38  ;;  %v945_v37 = vpop.f32.mrf.mxu1 }
 0x147   : > { %v1310_v2 = vpop.f32.mrf.mxu0  ;;  %v5933_v52 = vadd.f32 %v4521_v11, %v951_v24  ;;  %v946_v28 = vadd.f32 %v945_v37, %v6471_v59 }
 0x148   : > { %v4474_v50 = vpop.f32.mrf.mxu1  ;;  %4773 = vmatmul.mubr.msk.f32.gmra.mxu1 %vm144_vm0, %v6472_v34 }
 0x149   : > { %v4527_v33 = vpop.f32.mrf.mxu0  ;;  %4826 = vmatmul.mubr.msk.f32.gmra.mxu0 %vm144_vm0, %v3328_v15  ;;  %v5939_v61 = vadd.f32 %v1300_v45, %v946_v28  ;;  %v961_v16 = vadd.f32 %v4474_v50, %v6473_v53  ;;  %4775 = vmatprep.mubr.msk.f32.mxu1 %vm144_vm0, %v2940_v7 }
 0x14a   : > { %v955_v49 = vpop.f32.mrf.mxu1 }
 0x14b   : > { %v1320_v30 = vpop.f32.mrf.mxu0  ;;  %v5943_v47 = vadd.f32 %v4524_v22, %v961_v16  ;;  %v956_v60 = vadd.f32 %v955_v49, %v6474_v63 }
 0x14c   : > { %v4477_v25 = vpop.f32.mrf.mxu1  ;;  %4776 = vmatmul.mubr.msk.f32.gmra.mxu1 %vm144_vm0, %v2941_v51 }
 0x14d   : > { %v4582_v1 = vpop.f32.mrf.mxu0  ;;  %v5947_v54 = vadd.f32 %v1310_v2, %v956_v60  ;;  %v971_v10 = vadd.f32 %v4477_v25, %v6475_v31 }
 0x14e   : > { %v965_v17 = vpop.f32.mrf.mxu1 }
 0x14f   : > { %v1944_v40 = vpop.f32.mrf.mxu0  ;;  %v5950_v11 = vadd.f32 %v4527_v33, %v971_v10  ;;  %v966_v14 = vadd.f32 %v965_v17, %v6476_v26 }
 0x150   : > { %v4532_v0 = vpop.f32.mrf.mxu1 }
 0x151   : > { %v4585_v45 = vpop.f32.mrf.mxu0  ;;  %v5953_v38 = vadd.f32 %v1320_v30, %v966_v14  ;;  %v1717_v3 = vadd.f32 %v4532_v0, %v5780_v9 }
 0x152   : > { %v1557_v57 = vpop.f32.mrf.mxu1 }
 0x153   : > { %v1954_v22 = vpop.f32.mrf.mxu0  ;;  %v5956_v39 = vadd.f32 %v4582_v1, %v1717_v3  ;;  %v1716_v24 = vadd.f32 %v1557_v57, %v5786_v42 }
 0x154   : > { %v4535_v4 = vpop.f32.mrf.mxu1 }
 0x155   : > { %v4588_v15 = vpop.f32.mrf.mxu0  ;;  %v5959_v37 = vadd.f32 %v1944_v40, %v1716_v24  ;;  %v1719_v2 = vadd.f32 %v4535_v4, %v5792_v35 }
 0x156   : > { %v1567_v7 = vpop.f32.mrf.mxu1 }
 0x157   : > { %v1964_v59 = vpop.f32.mrf.mxu0  ;;  %v5962_v28 = vadd.f32 %v4585_v45, %v1719_v2  ;;  %v1718_v50 = vadd.f32 %v1567_v7, %v5798_v44 }
 0x158   : > { %v4538_v34 = vpop.f32.mrf.mxu1 }
 0x159   : > { %v4591_v9 = vpop.f32.mrf.mxu0  ;;  %v5965_v33 = vadd.f32 %v1954_v22, %v1718_v50  ;;  %v1721_v53 = vadd.f32 %v4538_v34, %v5804_v6 }
 0x15a   : > { %v1577_v16 = vpop.f32.mrf.mxu1 }
 0x15b   : > { %v1974_v42 = vpop.f32.mrf.mxu0  ;;  %v5968_v51 = vadd.f32 %v4588_v15, %v1721_v53  ;;  %v1720_v49 = vadd.f32 %v1577_v16, %v5810_v12 }
 0x15c   : > { %v4541_v30 = vpop.f32.mrf.mxu1 }
 0x15d   : > { %v4594_v35 = vpop.f32.mrf.mxu0  ;;  %v5971_v63 = vadd.f32 %v1964_v59, %v1720_v49  ;;  %v1723_v60 = vadd.f32 %v4541_v30, %v5816_v43 }
 0x15e   : > { %v1587_v25 = vpop.f32.mrf.mxu1 }
 0x15f   : > { %v1984_v44 = vpop.f32.mrf.mxu0  ;;  %v5974_v1 = vadd.f32 %v4591_v9, %v1723_v60  ;;  %v1722_v31 = vadd.f32 %v1587_v25, %v5822_v23 }
 0x160   : > { %v4544_v10 = vpop.f32.mrf.mxu1 }
 0x161   : > { %v4597_v6 = vpop.f32.mrf.mxu0  ;;  %v5977_v17 = vadd.f32 %v1974_v42, %v1722_v31  ;;  %v1725_v40 = vadd.f32 %v4544_v10, %v5828_v29 }
 0x162   : > { %v1597_v26 = vpop.f32.mrf.mxu1 }
 0x163   : > { %v1994_v12 = vpop.f32.mrf.mxu0  ;;  %v5980_v14 = vadd.f32 %v4594_v35, %v1725_v40  ;;  %v1724_v0 = vadd.f32 %v1597_v26, %v5834_v36 }
 0x164   : > { %v4547_v45 = vpop.f32.mrf.mxu1 }
 0x165   : > { %v4600_v43 = vpop.f32.mrf.mxu0  ;;  %v5983_v3 = vadd.f32 %v1984_v44, %v1724_v0  ;;  %v1727_v57 = vadd.f32 %v4547_v45, %v5840_v41 }
 0x166   : > { %v1607_v22 = vpop.f32.mrf.mxu1 }
 0x167   : > { %v2004_v23 = vpop.f32.mrf.mxu0  ;;  %v5986_v24 = vadd.f32 %v4597_v6, %v1727_v57  ;;  %v1726_v4 = vadd.f32 %v1607_v22, %v5846_v48 }
 0x168   : > { %v4550_v15 = vpop.f32.mrf.mxu1 }
 0x169   : > { %v4603_v29 = vpop.f32.mrf.mxu0  ;;  %v5989_v2 = vadd.f32 %v1994_v12, %v1726_v4  ;;  %v1729_v7 = vadd.f32 %v4550_v15, %v5852_v58 }
 0x16a   : > { %v1617_v59 = vpop.f32.mrf.mxu1 }
 0x16b   : > { %v2014_v36 = vpop.f32.mrf.mxu0  ;;  %v5992_v50 = vadd.f32 %v4600_v43, %v1729_v7  ;;  %v1728_v34 = vadd.f32 %v1617_v59, %v5858_v5 }
 0x16c   : > { %v4553_v9 = vpop.f32.mrf.mxu1 }
 0x16d   : > { %v4606_v41 = vpop.f32.mrf.mxu0  ;;  %v5995_v53 = vadd.f32 %v2004_v23, %v1728_v34  ;;  %v1731_v16 = vadd.f32 %v4553_v9, %v5864_v55 }
 0x16e   : > { %v1627_v42 = vpop.f32.mrf.mxu1 }
 0x16f   : > { %v2024_v48 = vpop.f32.mrf.mxu0  ;;  %v5998_v49 = vadd.f32 %v4603_v29, %v1731_v16  ;;  %v1730_v30 = vadd.f32 %v1627_v42, %v5870_v32 }
 0x170   : > { %v4556_v35 = vpop.f32.mrf.mxu1 }
 0x171   : > { %v4609_v58 = vpop.f32.mrf.mxu0  ;;  %v6001_v60 = vadd.f32 %v2014_v36, %v1730_v30  ;;  %v1733_v25 = vadd.f32 %v4556_v35, %v5876_v56 }
 0x172   : > { %v1637_v44 = vpop.f32.mrf.mxu1 }
 0x173   : > { %v2034_v5 = vpop.f32.mrf.mxu0  ;;  %v6004_v31 = vadd.f32 %v4606_v41, %v1733_v25  ;;  %v1732_v10 = vadd.f32 %v1637_v44, %v5882_v62 }
 0x174   : > { %v4559_v6 = vpop.f32.mrf.mxu1 }
 0x175   : > { %v4612_v55 = vpop.f32.mrf.mxu0  ;;  %v6007_v40 = vadd.f32 %v2024_v48, %v1732_v10  ;;  %v1735_v26 = vadd.f32 %v4559_v6, %v5888_v21 }
 0x176   : > { %v1647_v12 = vpop.f32.mrf.mxu1 }
 0x177   : > { %v2044_v32 = vpop.f32.mrf.mxu0  ;;  %v6010_v0 = vadd.f32 %v4609_v58, %v1735_v26  ;;  %v1734_v45 = vadd.f32 %v1647_v12, %v5894_v8 }
 0x178   : > { %v4562_v43 = vpop.f32.mrf.mxu1 }
 0x179   : > { %6477 = vst [vmem:[#allocation9_spill] sm:$0xff] %v6010_v0  ;;  %v4615_v56 = vpop.f32.mrf.mxu0  ;;  %v6013_v57 = vadd.f32 %v2034_v5, %v1734_v45  ;;  %v1737_v22 = vadd.f32 %v4562_v43, %v5900_v18 }
 0x17a   : > { %v1657_v23 = vpop.f32.mrf.mxu1 }
 0x17b   : > { %6478 = vst [vmem:[#allocation10_spill] sm:$0xff] %v6013_v57  ;;  %v2054_v62 = vpop.f32.mrf.mxu0  ;;  %v6016_v4 = vadd.f32 %v4612_v55, %v1737_v22  ;;  %v1736_v15 = vadd.f32 %v1657_v23, %v5905_v20 }
 0x17c   : > { %v4565_v29 = vpop.f32.mrf.mxu1 }
 0x17d   : > { %6479 = vst [vmem:[#allocation11_spill] sm:$0xff] %v6016_v4  ;;  %v4618_v21 = vpop.f32.mrf.mxu0  ;;  %v6019_v7 = vadd.f32 %v2044_v32, %v1736_v15  ;;  %v1739_v59 = vadd.f32 %v4565_v29, %v5910_v19 }
 0x17e   : > { %v1667_v36 = vpop.f32.mrf.mxu1 }
 0x17f   : > { %6480 = vst [vmem:[#allocation12_spill] sm:$0xff] %v6019_v7  ;;  %v2064_v8 = vpop.f32.mrf.mxu0  ;;  %v6022_v34 = vadd.f32 %v4615_v56, %v1739_v59  ;;  %v1738_v9 = vadd.f32 %v1667_v36, %v5915_v27 }
 0x180   : > { %v4568_v41 = vpop.f32.mrf.mxu1 }
 0x181   : > { %6481 = vst [vmem:[#allocation13_spill] sm:$0xff] %v6022_v34  ;;  %v4621_v18 = vpop.f32.mrf.mxu0  ;;  %v6025_v16 = vadd.f32 %v2054_v62, %v1738_v9  ;;  %v1741_v42 = vadd.f32 %v4568_v41, %v5921_v13 }
 0x182   : > { %v1677_v48 = vpop.f32.mrf.mxu1 }
 0x183   : > { %6482 = vst [vmem:[#allocation14_spill] sm:$0xff] %v6025_v16  ;;  %v2074_v20 = vpop.f32.mrf.mxu0  ;;  %v6028_v30 = vadd.f32 %v4618_v21, %v1741_v42  ;;  %v1740_v35 = vadd.f32 %v1677_v48, %v5927_v46 }
 0x184   : > { %v4571_v58 = vpop.f32.mrf.mxu1 }
 0x185   : > { %6483 = vst [vmem:[#allocation15_spill] sm:$0xff] %v6028_v30  ;;  %v4624_v19 = vpop.f32.mrf.mxu0  ;;  %v6031_v25 = vadd.f32 %v2064_v8, %v1740_v35  ;;  %v1743_v44 = vadd.f32 %v4571_v58, %v5933_v52 }
 0x186   : > { %v1687_v5 = vpop.f32.mrf.mxu1 }
 0x187   : > { %6484 = vst [vmem:[#allocation16_spill] sm:$0xff] %v6031_v25  ;;  %v2084_v27 = vpop.f32.mrf.mxu0  ;;  %v6034_v10 = vadd.f32 %v4621_v18, %v1743_v44  ;;  %v1742_v6 = vadd.f32 %v1687_v5, %v5939_v61 }
 0x188   : > { %v4574_v55 = vpop.f32.mrf.mxu1 }
 0x189   : > { %6485 = vst [vmem:[#allocation17_spill] sm:$0xff] %v6034_v10  ;;  %v4627_v13 = vpop.f32.mrf.mxu0  ;;  %v6037_v26 = vadd.f32 %v2074_v20, %v1742_v6  ;;  %v1745_v12 = vadd.f32 %v4574_v55, %v5943_v47 }
 0x18a   : > { %v1697_v32 = vpop.f32.mrf.mxu1 }
 0x18b   : > { %6486 = vst [vmem:[#allocation18_spill] sm:$0xff] %v6037_v26  ;;  %v2094_v46 = vpop.f32.mrf.mxu0  ;;  %v6040_v45 = vadd.f32 %v4624_v19, %v1745_v12  ;;  %v1744_v43 = vadd.f32 %v1697_v32, %v5947_v54 }
 0x18c   : > { %v4577_v56 = vpop.f32.mrf.mxu1 }
 0x18d   : > { %6487 = vst [vmem:[#allocation19_spill] sm:$0xff] %v6040_v45  ;;  %v6043_v52 = vpop.f32.mrf.mxu0  ;;  %v6045_v22 = vadd.f32 %v2084_v27, %v1744_v43  ;;  %v1747_v23 = vadd.f32 %v4577_v56, %v5950_v11 }
 0x18e   : > { %v1707_v61 = vpop.f32.mrf.mxu1 }
 0x18f   : > { %6488 = vst [vmem:[#allocation20_spill] sm:$0xff] %v6045_v22  ;;  %v6048_v62 = vpop.f32.mrf.mxu0  ;;  %v6050_v15 = vadd.f32 %v4627_v13, %v1747_v23  ;;  %v1746_v47 = vadd.f32 %v1707_v61, %v5953_v38 }
 0x190   : > { %v4632_v29 = vpop.f32.mrf.mxu1 }
 0x191   : > { %6489 = vst [vmem:[#allocation21_spill] sm:$0xff] %v6050_v15  ;;  %v6053_v21 = vpop.f32.mrf.mxu0  ;;  %v6055_v59 = vadd.f32 %v2094_v46, %v1746_v47 }
 0x192   : > { %v2331_v54 = vpop.f32.mrf.mxu1 }
 0x193   : > { %6490 = vst [vmem:[#allocation22_spill] sm:$0xff] %v6055_v59  ;;  %v6057_v36 = vpop.f32.mrf.mxu0 }
 0x194   : > { %v6059_v8 = vpop.f32.mrf.mxu1 }
 0x195   : > { %v6061_v9 = vpop.f32.mrf.mxu0 }
 0x196   : > { %v6063_v11 = vpop.f32.mrf.mxu1 }
 0x197   : > { %v6065_v41 = vpop.f32.mrf.mxu0 }
 0x198   : > { %v6067_v18 = vpop.f32.mrf.mxu1 }
 0x199   : > { %v6069_v42 = vpop.f32.mrf.mxu0 }
 0x19a   : > { %v6071_v38 = vpop.f32.mrf.mxu1 }
 0x19b   : > { %v6073_v48 = vpop.f32.mrf.mxu0 }
 0x19c   : > { %v6075_v20 = vpop.f32.mrf.mxu1 }
 0x19d   : > { %v6077_v35 = vpop.f32.mrf.mxu0 }
 0x19e   : > { %v6079_v58 = vpop.f32.mrf.mxu1 }
 0x19f   : > { %v6081_v19 = vpop.f32.mrf.mxu0 }
 0x1a0   : > { %v6083_v44 = vpop.f32.mrf.mxu1 }
 0x1a1   : > { %v6085_v5 = vpop.f32.mrf.mxu0 }
 0x1a2   : > { %v6087_v27 = vpop.f32.mrf.mxu1 }
 0x1a3   : > { %v6089_v6 = vpop.f32.mrf.mxu0 }
 0x1a4   : > { %v6091_v55 = vpop.f32.mrf.mxu1 }
 0x1a5   : > { %v6093_v13 = vpop.f32.mrf.mxu0 }
 0x1a6   : > { %v6095_v12 = vpop.f32.mrf.mxu1 }
 0x1a7   : > { %v6097_v32 = vpop.f32.mrf.mxu0 }
 0x1a8   : > { %v6099_v46 = vpop.f32.mrf.mxu1 }
 0x1a9   : > { %v6101_v43 = vpop.f32.mrf.mxu0 }
 0x1aa   : > { %v6103_v56 = vpop.f32.mrf.mxu1 }
 0x1ab   : > { %v6105_v23 = vpop.f32.mrf.mxu0 }
 0x1ac   : > { %v6107_v61 = vpop.f32.mrf.mxu1 }
 0x1ad   : > { %v6109_v47 = vpop.f32.mrf.mxu0 }
 0x1ae   : > { %6491 = vst [vmem:[#allocation23_spill] sm:$0xff] %v6109_v47  ;;  %v6111_v59 = vpop.f32.mrf.mxu1 }
 0x1af   : > { %v6113_v15 = vpop.f32.mrf.mxu0 }
 0x1b0   : > { %6492 = vst [vmem:[#allocation24_spill] sm:$0xff] %v6113_v15  ;;  %v6115_v22 = vpop.f32.mrf.mxu1 }
 0x1b1   : > { %v6117_v45 = vpop.f32.mrf.mxu0 }
 0x1b2   : > { %6493 = vst [vmem:[#allocation25_spill] sm:$0xff] %v6117_v45  ;;  %v6119_v26 = vpop.f32.mrf.mxu1 }
 0x1b3   : > { %v6121_v10 = vpop.f32.mrf.mxu0 }
 0x1b4   : > { %6494 = vst [vmem:[#allocation26_spill] sm:$0xff] %v6121_v10  ;;  %v6123_v25 = vpop.f32.mrf.mxu1 }
 0x1b5   : > { %6495 = vst [vmem:[#allocation27_spill] sm:$0xff] %v6123_v25  ;;  %v6125_v30 = vpop.f32.mrf.mxu0 }
 0x1b6   : > { %6496 = vst [vmem:[#allocation28_spill] sm:$0xff] %v6125_v30  ;;  %v6127_v16 = vpop.f32.mrf.mxu1 }
 0x1b7   : > { %6497 = vst [vmem:[#allocation29_spill] sm:$0xff] %v6127_v16  ;;  %v6129_v34 = vpop.f32.mrf.mxu0 }
 0x1b8   : > { %6498 = vst [vmem:[#allocation30_spill] sm:$0xff] %v6129_v34  ;;  %v6131_v7 = vpop.f32.mrf.mxu1 }
 0x1b9   : > { %6499 = vst [vmem:[#allocation31_spill] sm:$0xff] %v6131_v7  ;;  %v6133_v4 = vpop.f32.mrf.mxu0 }
 0x1ba   : > { %6500 = vst [vmem:[#allocation3_spill] sm:$0xff] %v6133_v4  ;;  %v6135_v57 = vpop.f32.mrf.mxu1 }
 0x1bb   : > { %6501 = vst [vmem:[#allocation32_spill] sm:$0xff] %v6135_v57  ;;  %v6137_v15 = vpop.f32.mrf.mxu0 }
 0x1bc   : > { %6502 = vst [vmem:[#allocation4_spill] sm:$0xff] %v6137_v15  ;;  %v6139_v45 = vpop.f32.mrf.mxu1 }
 0x1bd   : > { %6503 = vst [vmem:[#allocation33_spill] sm:$0xff] %v6139_v45  ;;  %v6141_v0 = vpop.f32.mrf.mxu0 }
 0x1be   : > { %6504 = vst [vmem:[#allocation5_spill] sm:$0xff] %v6141_v0  ;;  %v6143_v10 = vpop.f32.mrf.mxu1 }
 0x1bf   : > { %6505 = vst [vmem:[#allocation6_spill] sm:$0xff] %v6143_v10  ;;  %v6145_v25 = vpop.f32.mrf.mxu0 }
 0x1c0   : > { %6506 = vst [vmem:[#allocation7_spill] sm:$0xff] %v6145_v25  ;;  %v6147_v30 = vpop.f32.mrf.mxu1 }
 0x1c1   : > { %6507 = vst [vmem:[#allocation8_spill] sm:$0xff] %v6147_v30  ;;  %v6149_v16 = vpop.f32.mrf.mxu0 }
 0x1c2   : > { %6508 = vst [vmem:[#allocation34_spill] sm:$0xff] %v6149_v16  ;;  %v6151_v34 = vpop.f32.mrf.mxu1 }
 0x1c3   : > { %6509 = vst [vmem:[#allocation35_spill] sm:$0xff] %v6151_v34  ;;  %v6153_v7 = vpop.f32.mrf.mxu0  ;;  %v2491_v34 = vadd.f32 %v4632_v29, %v5956_v39  ;;  %v2492_v39 = vadd.f32 %v6063_v11, %v5965_v33 }
 0x1c4   : > { %6510 = vst [vmem:[#allocation36_spill] sm:$0xff] %v6153_v7  ;;  %v6155_v4 = vpop.f32.mrf.mxu1 }
 0x1c5   : > { %6511 = vst [vmem:[#allocation37_spill] sm:$0xff] %v6155_v4  ;;  %v6157_v57 = vpop.f32.mrf.mxu0 }
 0x1c6   : > { %6512 = vst [vmem:[#allocation38_spill] sm:$0xff] %v6157_v57  ;;  %v6159_v15 = vpop.f32.mrf.mxu1  ;;  %v2490_v57 = vadd.f32 %v2331_v54, %v5959_v37  ;;  %v2494_v54 = vadd.f32 %v6071_v38, %v5971_v63 }
 0x1c7   : > { %6513 = vst [vmem:[#allocation39_spill] sm:$0xff] %v6159_v15  ;;  %v6161_v45 = vpop.f32.mrf.mxu0 }
 0x1c8   : > { %6514 = vst [vmem:[#allocation40_spill] sm:$0xff] %v6161_v45  ;;  %v6163_v0 = vpop.f32.mrf.mxu1  ;;  %v2879_v45 = vadd.f32 %v6043_v52, %v2491_v34  ;;  %v2882_v63 = vadd.f32 %v6065_v41, %v2494_v54 }
 0x1c9   : > { %6515 = vst [vmem:[#allocation41_spill] sm:$0xff] %v6163_v0  ;;  %v6165_v10 = vpop.f32.mrf.mxu0 }
 0x1ca   : > { %6516 = vst [vmem:[#allocation42_spill] sm:$0xff] %v6165_v10  ;;  %v6167_v25 = vpop.f32.mrf.mxu1  ;;  %v2493_v10 = vadd.f32 %v6059_v8, %v5962_v28 }
 0x1cb   : > { %6517 = vst [vmem:[#allocation43_spill] sm:$0xff] %v6167_v25  ;;  %v6169_v16 = vpop.f32.mrf.mxu0  ;;  %v2878_v25 = vadd.f32 %v6048_v62, %v2490_v57  ;;  %v2495_v57 = vadd.f32 %v6067_v18, %v5968_v51  ;;  %v2497_v51 = vadd.f32 %v6075_v20, %v5974_v1 }
 0x1cc   : > { %6518 = vst [vmem:[#allocation44_spill] sm:$0xff] %v6169_v16  ;;  %v6172_v7 = vpop.f32.mrf.mxu1  ;;  %v2881_v28 = vadd.f32 %v6053_v21, %v2493_v10 }
 0x1cd   : > { %v4782_v4 = vpop.f32.mrf.mxu0  ;;  %v2883_v10 = vadd.f32 %v6061_v9, %v2495_v57  ;;  %v2885_v1 = vadd.f32 %v6069_v42, %v2497_v51 }
 0x1ce   : > { %v6175_v30 = vpop.f32.mrf.mxu1 }
 0x1cf   : > { %6519 = vst [vmem:[#allocation45_spill] sm:$0xff] %v6175_v30  ;;  %v3493_v15 = vpop.f32.mrf.mxu0 }
 0x1d0   : > { %v4732_v0 = vpop.f32.mrf.mxu1 }
 0x1d1   : > { %v4785_v47 = vpop.f32.mrf.mxu0  ;;  %v3266_v29 = vadd.f32 %v4732_v0, %v2879_v45  ;;  %v2880_v45 = vadd.f32 %v6057_v36, %v2492_v39 }
 0x1d2   : > { %v3106_v37 = vpop.f32.mrf.mxu1 }
 0x1d3   : > { %v3503_v34 = vpop.f32.mrf.mxu0  ;;  %v3653_v52 = vadd.f32 %v4782_v4, %v3266_v29  ;;  %v3265_v62 = vadd.f32 %v3106_v37, %v2878_v25 }
 0x1d4   : > { %v4735_v33 = vpop.f32.mrf.mxu1 }
 0x1d5   : > { %v4788_v0 = vpop.f32.mrf.mxu0  ;;  %3686 = vst.msk [vmem:[%s6188_s8 + $0x8] sm:$0xff] %vm3684_vm2, %v3653_v52  ;;  %v3652_v8 = vadd.f32 %v3493_v15, %v3265_v62  ;;  %v3268_v11 = vadd.f32 %v4735_v33, %v2881_v28  ;;  %v2496_v15 = vadd.f32 %v6079_v58, %v5977_v17  ;;  %v2498_v58 = vadd.f32 %v6087_v27, %v5983_v3 }
 0x1d6   : > { %v3116_v16 = vpop.f32.mrf.mxu1 }
 0x1d7   : > { %v3513_v30 = vpop.f32.mrf.mxu0  ;;  %3685 = vst.msk [vmem:[%s6188_s8] sm:$0xff] %vm3684_vm2, %v3652_v8  ;;  %v3655_v4 = vadd.f32 %v4785_v47, %v3268_v11  ;;  %v3267_v25 = vadd.f32 %v3116_v16, %v2880_v45  ;;  %v2499_v16 = vadd.f32 %v6083_v44, %v5980_v14  ;;  %v2884_v17 = vadd.f32 %v6073_v48, %v2496_v15 }
 0x1d8   : > { %v4738_v21 = vpop.f32.mrf.mxu1  ;;  %v2501_v44 = vadd.f32 %v6091_v55, %v5986_v24  ;;  %v2886_v3 = vadd.f32 %v6081_v19, %v2498_v58  ;;  %v2503_v55 = vadd.f32 %v6099_v46, %v5992_v50  ;;  %v2505_v46 = vadd.f32 %v6107_v61, %v5998_v49 }
 0x1d9   : > { %v4791_v36 = vpop.f32.mrf.mxu0  ;;  %3688 = vst.msk [vmem:[%s6188_s8 + $0x18] sm:$0xff] %vm3684_vm2, %v3655_v4  ;;  %v3654_v18 = vadd.f32 %v3503_v34, %v3267_v25  ;;  %v3270_v9 = vadd.f32 %v4738_v21, %v2883_v10  ;;  %v2887_v14 = vadd.f32 %v6077_v35, %v2499_v16  ;;  %v2507_v61 = vadd.f32 %v6115_v22, %v6004_v31  ;;  %v6521_v22 = vld [vmem:[#allocation9_spill] sm:$0xff] }
 0x1da   : > { %v3126_v38 = vpop.f32.mrf.mxu1  ;;  %v2889_v24 = vadd.f32 %v6085_v5, %v2501_v44  ;;  %v2891_v50 = vadd.f32 %v6093_v13, %v2503_v55  ;;  %v2893_v49 = vadd.f32 %v6101_v43, %v2505_v46 }
 0x1db   : > { %v3523_v39 = vpop.f32.mrf.mxu0  ;;  %3687 = vst.msk [vmem:[%s6188_s8 + $0x10] sm:$0xff] %vm3684_vm2, %v3654_v18  ;;  %v3657_v20 = vadd.f32 %v4788_v0, %v3270_v9  ;;  %v3269_v41 = vadd.f32 %v3126_v38, %v2882_v63 }
 0x1dc   : > { %v4741_v47 = vpop.f32.mrf.mxu1 }
 0x1dd   : > { %v4794_v29 = vpop.f32.mrf.mxu0  ;;  %3690 = vst.msk [vmem:[%s6188_s8 + $0x28] sm:$0xff] %vm3684_vm2, %v3657_v20  ;;  %v3656_v37 = vadd.f32 %v3513_v30, %v3269_v41  ;;  %v3272_v42 = vadd.f32 %v4741_v47, %v2885_v1  ;;  %v2500_v30 = vadd.f32 %v6095_v12, %v5989_v2  ;;  %v2502_v12 = vadd.f32 %v6103_v56, %v5995_v53  ;;  %v6520_v20 = vld [vmem:[#allocation23_spill] sm:$0xff] }
 0x1de   : > { %v3136_v34 = vpop.f32.mrf.mxu1  ;;  %v2504_v56 = vadd.f32 %v6111_v59, %v6001_v60  ;;  %v2506_v59 = vadd.f32 %v6119_v26, %v6007_v40  ;;  %v2895_v31 = vadd.f32 %v6520_v20, %v2507_v61  ;;  %v6522_v41 = vld [vmem:[#allocation27_spill] sm:$0xff]  ;;  %v6524_v26 = vld [vmem:[#allocation10_spill] sm:$0xff]  ;;  %v6541_v20 = vld [vmem:[#allocation4_spill] sm:$0xff] }
 0x1df   : > { %v3533_v28 = vpop.f32.mrf.mxu0  ;;  %3689 = vst.msk [vmem:[%s6188_s8 + $0x20] sm:$0xff] %vm3684_vm2, %v3656_v37  ;;  %v3659_v57 = vadd.f32 %v4791_v36, %v3272_v42  ;;  %v3271_v48 = vadd.f32 %v3136_v34, %v2884_v17  ;;  %v2888_v2 = vadd.f32 %v6089_v6, %v2500_v30  ;;  %v2890_v53 = vadd.f32 %v6097_v32, %v2502_v12  ;;  %v6523_v37 = vld [vmem:[#allocation24_spill] sm:$0xff]  ;;  %v6525_v42 = vld [vmem:[#allocation29_spill] sm:$0xff] }
 0x1e0   : > { %v4744_v52 = vpop.f32.mrf.mxu1  ;;  %v2892_v60 = vadd.f32 %v6105_v23, %v2504_v56  ;;  %v2509_v47 = vadd.f32 %v6522_v41, %v6521_v22  ;;  %v2894_v40 = vadd.f32 %v6523_v37, %v2506_v59  ;;  %v2508_v34 = vadd.f32 %v6525_v42, %v6524_v26  ;;  %v6542_v22 = vld [vmem:[#allocation16_spill] sm:$0xff]  ;;  %v6543_v41 = vld [vmem:[#allocation35_spill] sm:$0xff]  ;;  %v6544_v37 = vld [vmem:[#allocation5_spill] sm:$0xff] }
 0x1e1   : > { %v4797_v62 = vpop.f32.mrf.mxu0  ;;  %3692 = vst.msk [vmem:[%s6188_s8 + $0x38] sm:$0xff] %vm3684_vm2, %v3659_v57  ;;  %v3658_v27 = vadd.f32 %v3523_v39, %v3271_v48  ;;  %v3274_v35 = vadd.f32 %v4744_v52, %v2887_v14  ;;  %v6526_v48 = vld [vmem:[#allocation25_spill] sm:$0xff] }
 0x1e2   : > { %v3146_v33 = vpop.f32.mrf.mxu1  ;;  %v2897_v52 = vadd.f32 %v6526_v48, %v2509_v47  ;;  %v2514_v47 = vadd.f32 %v6543_v41, %v6542_v22  ;;  %v6545_v26 = vld [vmem:[#allocation17_spill] sm:$0xff]  ;;  %v6547_v48 = vld [vmem:[#allocation7_spill] sm:$0xff]  ;;  %v6562_v22 = vld [vmem:[#allocation44_spill] sm:$0xff] }
 0x1e3   : > { %v3543_v0 = vpop.f32.mrf.mxu0  ;;  %3691 = vst.msk [vmem:[%s6188_s8 + $0x30] sm:$0xff] %vm3684_vm2, %v3658_v27  ;;  %v3661_v45 = vadd.f32 %v4794_v29, %v3274_v35  ;;  %v3273_v19 = vadd.f32 %v3146_v33, %v2886_v3  ;;  %v6528_v3 = vld [vmem:[#allocation31_spill] sm:$0xff]  ;;  %v6546_v42 = vld [vmem:[#allocation37_spill] sm:$0xff] }
 0x1e4   : > { %v4747_v54 = vpop.f32.mrf.mxu1 }
 0x1e5   : > { %v4800_v8 = vpop.f32.mrf.mxu0  ;;  %3694 = vst.msk [vmem:[%s6188_s8 + $0x48] sm:$0xff] %vm3684_vm2, %v3661_v45  ;;  %v3660_v11 = vadd.f32 %v3533_v28, %v3273_v19  ;;  %v3276_v5 = vadd.f32 %v4747_v54, %v2889_v24  ;;  %v6529_v24 = vld [vmem:[#allocation26_spill] sm:$0xff]  ;;  %v6530_v45 = vld [vmem:[#allocation12_spill] sm:$0xff] }
 0x1e6   : > { %v3156_v10 = vpop.f32.mrf.mxu1  ;;  %v2896_v55 = vadd.f32 %v6529_v24, %v2508_v34  ;;  %v6531_v19 = vld [vmem:[#allocation32_spill] sm:$0xff]  ;;  %v2517_v34 = vadd.f32 %v6546_v42, %v6545_v26  ;;  %v6550_v24 = vld [vmem:[#allocation34_spill] sm:$0xff] }
 0x1e7   : > { %v3553_v51 = vpop.f32.mrf.mxu0  ;;  %3693 = vst.msk [vmem:[%s6188_s8 + $0x40] sm:$0xff] %vm3684_vm2, %v3660_v11  ;;  %v3663_v4 = vadd.f32 %v4797_v62, %v3276_v5  ;;  %v3275_v6 = vadd.f32 %v3156_v10, %v2888_v2  ;;  %v6527_v62 = vld [vmem:[#allocation11_spill] sm:$0xff]  ;;  %v2510_v54 = vadd.f32 %v6531_v19, %v6530_v45  ;;  %v6532_v5 = vld [vmem:[#allocation28_spill] sm:$0xff]  ;;  %v6552_v19 = vld [vmem:[#allocation41_spill] sm:$0xff] }
 0x1e8   : > { %v4750_v25 = vpop.f32.mrf.mxu1  ;;  %v2511_v30 = vadd.f32 %v6528_v3, %v6527_v62  ;;  %v6548_v62 = vld [vmem:[#allocation18_spill] sm:$0xff]  ;;  %v6549_v3 = vld [vmem:[#allocation39_spill] sm:$0xff] }
 0x1e9   : > { %v4803_v21 = vpop.f32.mrf.mxu0  ;;  %3696 = vst.msk [vmem:[%s6188_s8 + $0x58] sm:$0xff] %vm3684_vm2, %v3663_v4  ;;  %v3662_v36 = vadd.f32 %v3543_v0, %v3275_v6  ;;  %v3278_v13 = vadd.f32 %v4750_v25, %v2891_v50  ;;  %v6534_v50 = vld [vmem:[#allocation33_spill] sm:$0xff]  ;;  %v6551_v45 = vld [vmem:[#allocation19_spill] sm:$0xff] }
 0x1ea   : > { %v3166_v63 = vpop.f32.mrf.mxu1  ;;  %v2899_v10 = vadd.f32 %v6532_v5, %v2511_v30  ;;  %v2516_v30 = vadd.f32 %v6549_v3, %v6548_v62  ;;  %v6553_v5 = vld [vmem:[#allocation36_spill] sm:$0xff] }
 0x1eb   : > { %v3563_v15 = vpop.f32.mrf.mxu0  ;;  %3695 = vst.msk [vmem:[%s6188_s8 + $0x50] sm:$0xff] %vm3684_vm2, %v3662_v36  ;;  %v3665_v18 = vadd.f32 %v4800_v8, %v3278_v13  ;;  %v3277_v32 = vadd.f32 %v3166_v63, %v2890_v53  ;;  %v6535_v53 = vld [vmem:[#allocation30_spill] sm:$0xff] }
 0x1ec   : > { %v4753_v9 = vpop.f32.mrf.mxu1  ;;  %v2898_v56 = vadd.f32 %v6535_v53, %v2510_v54  ;;  %v6536_v36 = vld [vmem:[#allocation14_spill] sm:$0xff]  ;;  %v2519_v54 = vadd.f32 %v6552_v19, %v6551_v45 }
 0x1ed   : > { %v4806_v38 = vpop.f32.mrf.mxu0  ;;  %3698 = vst.msk [vmem:[%s6188_s8 + $0x68] sm:$0xff] %vm3684_vm2, %v3665_v18  ;;  %v3664_v39 = vadd.f32 %v3553_v51, %v3277_v32  ;;  %v3280_v43 = vadd.f32 %v4753_v9, %v2893_v49  ;;  %v6533_v51 = vld [vmem:[#allocation13_spill] sm:$0xff]  ;;  %v6537_v13 = vld [vmem:[#allocation6_spill] sm:$0xff]  ;;  %v6538_v32 = vld [vmem:[#allocation3_spill] sm:$0xff] }
 0x1ee   : > { %v3176_v1 = vpop.f32.mrf.mxu1  ;;  %v2513_v46 = vadd.f32 %v6534_v50, %v6533_v51  ;;  %v2512_v63 = vadd.f32 %v6537_v13, %v6536_v36  ;;  %v6554_v51 = vld [vmem:[#allocation20_spill] sm:$0xff]  ;;  %v6555_v50 = vld [vmem:[#allocation43_spill] sm:$0xff] }
 0x1ef   : > { %v3573_v16 = vpop.f32.mrf.mxu0  ;;  %3697 = vst.msk [vmem:[%s6188_s8 + $0x60] sm:$0xff] %vm3684_vm2, %v3664_v39  ;;  %v3667_v29 = vadd.f32 %v4803_v21, %v3280_v43  ;;  %v3279_v23 = vadd.f32 %v3176_v1, %v2892_v60  ;;  %v6540_v60 = vld [vmem:[#allocation8_spill] sm:$0xff] }
 0x1f0   : > { %v4756_v17 = vpop.f32.mrf.mxu1  ;;  %v2901_v9 = vadd.f32 %v6538_v32, %v2513_v46  ;;  %v2518_v46 = vadd.f32 %v6555_v50, %v6554_v51  ;;  %v6559_v32 = vld [vmem:[#allocation22_spill] sm:$0xff] }
 0x1f1   : > { %v4809_v58 = vpop.f32.mrf.mxu0  ;;  %3700 = vst.msk [vmem:[%s6188_s8 + $0x78] sm:$0xff] %vm3684_vm2, %v3667_v29  ;;  %v3666_v28 = vadd.f32 %v3563_v15, %v3279_v23  ;;  %v3282_v14 = vadd.f32 %v4756_v17, %v2895_v31  ;;  %v2900_v31 = vadd.f32 %v6541_v20, %v2512_v63 }
 0x1f2   : > { %v3186_v44 = vpop.f32.mrf.mxu1 }
 0x1f3   : > { %v3583_v57 = vpop.f32.mrf.mxu0  ;;  %3699 = vst.msk [vmem:[%s6188_s8 + $0x70] sm:$0xff] %vm3684_vm2, %v3666_v28  ;;  %v3669_v27 = vadd.f32 %v4806_v38, %v3282_v14  ;;  %v3281_v35 = vadd.f32 %v3186_v44, %v2894_v40  ;;  %v6539_v38 = vld [vmem:[#allocation15_spill] sm:$0xff] }
 0x1f4   : > { %v4759_v33 = vpop.f32.mrf.mxu1  ;;  %v2515_v59 = vadd.f32 %v6540_v60, %v6539_v38 }
 0x1f5   : > { %v4812_v0 = vpop.f32.mrf.mxu0  ;;  %3702 = vst.msk [vmem:[%s6188_s8 + $0x88] sm:$0xff] %vm3684_vm2, %v3669_v27  ;;  %v3668_v8 = vadd.f32 %v3573_v16, %v3281_v35  ;;  %v3284_v2 = vadd.f32 %v4759_v33, %v2897_v52  ;;  %v2902_v52 = vadd.f32 %v6547_v48, %v2514_v47 }
 0x1f6   : > { %v3196_v12 = vpop.f32.mrf.mxu1  ;;  %v2903_v40 = vadd.f32 %v6544_v37, %v2515_v59 }
 0x1f7   : > { %v3593_v11 = vpop.f32.mrf.mxu0  ;;  %3701 = vst.msk [vmem:[%s6188_s8 + $0x80] sm:$0xff] %vm3684_vm2, %v3668_v8  ;;  %v3671_v4 = vadd.f32 %v4809_v58, %v3284_v2  ;;  %v3283_v6 = vadd.f32 %v3196_v12, %v2896_v55  ;;  %v2905_v55 = vadd.f32 %v6550_v24, %v2517_v34 }
 0x1f8   : > { %v4762_v25 = vpop.f32.mrf.mxu1 }
 0x1f9   : > { %v4815_v21 = vpop.f32.mrf.mxu0  ;;  %3704 = vst.msk [vmem:[%s6188_s8 + $0x98] sm:$0xff] %vm3684_vm2, %v3671_v4  ;;  %v3670_v15 = vadd.f32 %v3583_v57, %v3283_v6  ;;  %v3286_v49 = vadd.f32 %v4762_v25, %v2899_v10  ;;  %v2904_v10 = vadd.f32 %v6553_v5, %v2516_v30 }
 0x1fa   : > { %v3206_v61 = vpop.f32.mrf.mxu1 }
 0x1fb   : > { %v3603_v18 = vpop.f32.mrf.mxu0  ;;  %3703 = vst.msk [vmem:[%s6188_s8 + $0x90] sm:$0xff] %vm3684_vm2, %v3670_v15  ;;  %v3673_v39 = vadd.f32 %v4812_v0, %v3286_v49  ;;  %v3285_v43 = vadd.f32 %v3206_v61, %v2898_v56  ;;  %v6557_v56 = vld [vmem:[#allocation21_spill] sm:$0xff]  ;;  %v6558_v61 = vld [vmem:[#allocation40_spill] sm:$0xff] }
 0x1fc   : > { %v4765_v1 = vpop.f32.mrf.mxu1  ;;  %v2521_v36 = vadd.f32 %v6172_v7, %v6557_v56 }
 0x1fd   : > { %v4818_v16 = vpop.f32.mrf.mxu0  ;;  %3706 = vst.msk [vmem:[%s6188_s8 + $0xa8] sm:$0xff] %vm3684_vm2, %v3673_v39  ;;  %v3672_v29 = vadd.f32 %v3593_v11, %v3285_v43  ;;  %v3288_v23 = vadd.f32 %v4765_v1, %v2901_v9  ;;  %v6560_v9 = vld [vmem:[#allocation45_spill] sm:$0xff]  ;;  %v6561_v43 = vld [vmem:[#allocation42_spill] sm:$0xff] }
 0x1fe   : > { %v3216_v17 = vpop.f32.mrf.mxu1  ;;  %v2520_v38 = vadd.f32 %v6560_v9, %v6559_v32  ;;  %v2909_v7 = vadd.f32 %v6561_v43, %v2521_v36 }
 0x1ff   : > { %v3613_v58 = vpop.f32.mrf.mxu0  ;;  %3705 = vst.msk [vmem:[%s6188_s8 + $0xa0] sm:$0xff] %vm3684_vm2, %v3672_v29  ;;  %v3675_v28 = vadd.f32 %v4815_v21, %v3288_v23  ;;  %v3287_v14 = vadd.f32 %v3216_v17, %v2900_v31  ;;  %v6556_v21 = vld [vmem:[#allocation38_spill] sm:$0xff] }
 0x200   : > { %v4768_v44 = vpop.f32.mrf.mxu1  ;;  %v2907_v53 = vadd.f32 %v6556_v21, %v2519_v54  ;;  %v2908_v41 = vadd.f32 %v6562_v22, %v2520_v38 }
 0x201   : > { %v4821_v57 = vpop.f32.mrf.mxu0  ;;  %3708 = vst.msk [vmem:[%s6188_s8 + $0xb8] sm:$0xff] %vm3684_vm2, %v3675_v28  ;;  %v3674_v27 = vadd.f32 %v3603_v18, %v3287_v14  ;;  %v3290_v35 = vadd.f32 %v4768_v44, %v2903_v40  ;;  %v2906_v18 = vadd.f32 %v6558_v61, %v2518_v46 }
 0x202   : > { %v3226_v33 = vpop.f32.mrf.mxu1 }
 0x203   : > { %v3623_v0 = vpop.f32.mrf.mxu0  ;;  %3707 = vst.msk [vmem:[%s6188_s8 + $0xb0] sm:$0xff] %vm3684_vm2, %v3674_v27  ;;  %v3677_v8 = vadd.f32 %v4818_v16, %v3290_v35  ;;  %v3289_v2 = vadd.f32 %v3226_v33, %v2902_v52 }
 0x204   : > { %v4771_v12 = vpop.f32.mrf.mxu1 }
 0x205   : > { %v4824_v11 = vpop.f32.mrf.mxu0  ;;  %3710 = vst.msk [vmem:[%s6188_s8 + $0xc8] sm:$0xff] %vm3684_vm2, %v3677_v8  ;;  %v3676_v4 = vadd.f32 %v3613_v58, %v3289_v2  ;;  %v3292_v6 = vadd.f32 %v4771_v12, %v2905_v55 }
 0x206   : > { %v3236_v25 = vpop.f32.mrf.mxu1 }
 0x207   : > { %3709 = vst.msk [vmem:[%s6188_s8 + $0xc0] sm:$0xff] %vm3684_vm2, %v3676_v4  ;;  %v3679_v13 = vadd.f32 %v4821_v57, %v3292_v6  ;;  %v3291_v63 = vadd.f32 %v3236_v25, %v2904_v10  ;;  %v3633_v49 = vpop.f32.mrf.mxu0 }
 0x208   : > { %v4774_v15 = vpop.f32.mrf.mxu1 }
 0x209   : > { %3712 = vst.msk [vmem:[%s6188_s8 + $0xd8] sm:$0xff] %vm3684_vm2, %v3679_v13  ;;  %v3678_v60 = vadd.f32 %v3623_v0, %v3291_v63  ;;  %v3294_v59 = vadd.f32 %v4774_v15, %v2907_v53  ;;  %v4827_v31 = vpop.f32.mrf.mxu0 }
 0x20a   : > { %v3246_v39 = vpop.f32.mrf.mxu1 }
 0x20b   : > { %3711 = vst.msk [vmem:[%s6188_s8 + $0xd0] sm:$0xff] %vm3684_vm2, %v3678_v60  ;;  %v3681_v1 = vadd.f32 %v4824_v11, %v3294_v59  ;;  %v3293_v16 = vadd.f32 %v3246_v39, %v2906_v18  ;;  %v3643_v37 = vpop.f32.mrf.mxu0 }
 0x20c   : > { %v4777_v20 = vpop.f32.mrf.mxu1 }
 0x20d   : > { %3714 = vst.msk [vmem:[%s6188_s8 + $0xe8] sm:$0xff] %vm3684_vm2, %v3681_v1  ;;  %v3680_v47 = vadd.f32 %v3633_v49, %v3293_v16  ;;  %v3296_v29 = vadd.f32 %v4777_v20, %v2909_v7 }
 0x20e   : > { %v3256_v23 = vpop.f32.mrf.mxu1 }
 0x20f   : > { %3713 = vst.msk [vmem:[%s6188_s8 + $0xe0] sm:$0xff] %vm3684_vm2, %v3680_v47  ;;  %v3683_v17 = vadd.f32 %v4827_v31, %v3296_v29  ;;  %v3295_v58 = vadd.f32 %v3256_v23, %v2908_v41 }
 0x211   : > { %3716 = vst.msk [vmem:[%s6188_s8 + $0xf8] sm:$0xff] %vm3684_vm2, %v3683_v17  ;;  %v3682_v40 = vadd.f32 %v3643_v37, %v3295_v58 }
 0x213   : > { %3715 = vst.msk [vmem:[%s6188_s8 + $0xf0] sm:$0xff] %vm3684_vm2, %v3682_v40 }
 0x214 PF: > { %s12_s9 = sadd.s32 1, %s4845_s9  }
 0x215   : > { %p9_p4 = scmp.ge.s32.totalorder %s12_s9, 4  }
 0x217   :  { %11 = sbr.rel (!%p9_p4) target bundleno = 1 (0x1), region = 68 }

</bundles_post_ra>
